<compile_context>
chip_gen: v7x
topology: tpu7x:2x2x1
jax: 0.10.0
libtpu: 0.0.40
codegen_flags: <defaults>
</compile_context>

<pallas_src>
import functools

import numpy as np
import jax
import jax.numpy as jnp
from jax.experimental import pallas as pl
from jax.experimental.pallas import tpu as pltpu

# ----------------------------- config -----------------------------
IN_FEATURES = 16      # ALIGNNConv in_features
OUT_FEATURES = 16     # ALIGNNConv out_features
EPS_LN = 1e-5         # torch.nn.LayerNorm default eps
MXU_DTYPE = jnp.bfloat16   # matmul-input dtype (f32 accumulation via preferred_element_type)


# ----------------------------- in-kernel helpers -----------------------------
def _layernorm(x, gamma, beta):
    mean = jnp.mean(x, axis=-1, keepdims=True)
    var = jnp.mean((x - mean) ** 2, axis=-1, keepdims=True)
    return (x - mean) * jax.lax.rsqrt(var + EPS_LN) * gamma + beta


def _silu(x):
    return x * jax.nn.sigmoid(x)


def _egcn(node_feats, edge_feats, src_ref, dst_ref,
          proj_ref, gsrc_ref, gdst_ref, scat_ref, acc_ref,
          gn, bn, ge, be, w_node, w_edge, *, fout, residual):
    """One EdgeGatedGraphConv.

    node_feats : [N, Fn] f32 value        edge_feats : [E, Fe] f32 value
    src_ref / dst_ref : SMEM int32 [E]    edge endpoints (already range-clamped)
    proj_ref : VMEM [N, 4*Fout]           stacked node projection,
                                          cols = [src_gate | dst_update | dst_gate | src_update]
    gsrc_ref / gdst_ref : VMEM [E, 4*Fout]  gathered projection rows (src / dst endpoint)
    scat_ref : VMEM [E, 2*Fout]           per-edge scatter operands [Bh_src*sigma | sigma]
    acc_ref  : VMEM [N, 2*Fout]           segment-sum accumulator   [sum_sigma_h | sum_sigma]
    """
    f = fout
    n_edges = src_ref.shape[0]

    x_ln = _silu(_layernorm(node_feats, gn, bn))        # f32 elementwise
    y_ln = _silu(_layernorm(edge_feats, ge, be))

    # single MXU pass for all four node-side linears (bf16 inputs, f32 accumulation)
    proj = jnp.dot(x_ln.astype(MXU_DTYPE), w_node, preferred_element_type=jnp.float32)
    proj_ref[...] = proj
    y_e = jnp.dot(y_ln.astype(MXU_DTYPE), w_edge, preferred_element_type=jnp.float32)

    # ---- gather: O(E*F) row copies (replaces the dense one-hot MXU gathers) ----
    def gather_body(e, carry):
        s = src_ref[e]
        d = dst_ref[e]
        gsrc_ref[pl.ds(e, 1), :] = proj_ref[pl.ds(s, 1), :]
        gdst_ref[pl.ds(e, 1), :] = proj_ref[pl.ds(d, 1), :]
        return carry

    jax.lax.fori_loop(0, n_edges, gather_body, 0)

    gsrc = gsrc_ref[...]
    e_src_g = gsrc[:, 0:f]                       # src_gate(x)[src]
    bh_src = gsrc[:, f:2 * f]                    # dst_update(x)[src]  ("Bh")
    e_dst_g = gdst_ref[...][:, 2 * f:3 * f]      # dst_gate(x)[dst]

    y_new = e_src_g + e_dst_g + y_e
    sigma = jax.nn.sigmoid(y_new)                # f32

    # scatter operands stay f32 (no bf16 truncation of the segment-sum terms);
    # static lane-slice stores instead of a concatenate.
    scat_ref[:, 0:f] = bh_src * sigma
    scat_ref[:, f:2 * f] = sigma

    # ---- scatter-add segment sums into the VMEM accumulator ----
    acc_ref[...] = jnp.zeros_like(acc_ref)

    def scatter_body(e, carry):
        d = dst_ref[e]
        acc_ref[pl.ds(d, 1), :] = acc_ref[pl.ds(d, 1), :] + scat_ref[pl.ds(e, 1), :]
        return carry

    jax.lax.fori_loop(0, n_edges, scatter_body, 0)

    acc = acc_ref[...]
    h = acc[:, 0:f] / (acc[:, f:2 * f] + 1e-6)   # exact division (review concern)
    x_out = proj[:, 3 * f:4 * f] + h             # src_update(x) + h
    if residual:
        x_out = node_feats + x_out
        y_new = edge_feats + y_new
    return x_out, y_new


# ----------------------------- fused ALIGNNConv kernel -----------------------------
def _alignn_conv_kernel(
    # SMEM int32 index vectors
    g_src_ref, g_dst_ref, lg_src_ref, lg_dst_ref,
    # features
    x_ref, y_ref, z_ref,
    # node_update EdgeGatedGraphConv params
    n_gn_ref, n_bn_ref, n_ge_ref, n_be_ref, n_wn_ref, n_we_ref,
    # edge_update EdgeGatedGraphConv params
    e_gn_ref, e_bn_ref, e_ge_ref, e_be_ref, e_wn_ref, e_we_ref,
    # outputs
    xo_ref, yo_ref, zo_ref,
    # scratch (stage 1, then stage 2)
    proj1_ref, gsrc1_ref, gdst1_ref, scat1_ref, acc1_ref,
    proj2_ref, gsrc2_ref, gdst2_ref, scat2_ref, acc2_ref,
    *, fout, residual):
    # stage 1: node update on the crystal graph g: (x, y) -> (x_new, y_mid)
    x_new, y_mid = _egcn(
        x_ref[...], y_ref[...], g_src_ref, g_dst_ref,
        proj1_ref, gsrc1_ref, gdst1_ref, scat1_ref, acc1_ref,
        n_gn_ref[...], n_bn_ref[...], n_ge_ref[...], n_be_ref[...],
        n_wn_ref[...].astype(MXU_DTYPE), n_we_ref[...].astype(MXU_DTYPE),
        fout=fout, residual=residual)
    # stage 2: edge update on the line graph lg: (y_mid, z) -> (y_new, z_new)
    y_new, z_new = _egcn(
        y_mid, z_ref[...], lg_src_ref, lg_dst_ref,
        proj2_ref, gsrc2_ref, gdst2_ref, scat2_ref, acc2_ref,
        e_gn_ref[...], e_bn_ref[...], e_ge_ref[...], e_be_ref[...],
        e_wn_ref[...].astype(MXU_DTYPE), e_we_ref[...].astype(MXU_DTYPE),
        fout=fout, residual=residual)

    xo_ref[...] = x_new
    yo_ref[...] = y_new
    zo_ref[...] = z_new


def alignn_conv(params, x, y, z, g_src, g_dst, lg_src, lg_dst, residual=False):
    """ALIGNNConv.forward: (x, y) = node_update(g, x, y); (y, z) = edge_update(lg, y, z)."""
    n = x.shape[0]
    e = y.shape[0]
    t = z.shape[0]
    p_n, p_e = params['node_update'], params['edge_update']
    fout = p_n['w_node'].shape[1] // 4

    # one copy of each index vector, clamped to the valid range (OOB guard for the
    # in-kernel dynamic VMEM addressing).
    g_src = jnp.clip(g_src.astype(jnp.int32), 0, n - 1)
    g_dst = jnp.clip(g_dst.astype(jnp.int32), 0, n - 1)
    lg_src = jnp.clip(lg_src.astype(jnp.int32), 0, e - 1)
    lg_dst = jnp.clip(lg_dst.astype(jnp.int32), 0, e - 1)

    smem = pl.BlockSpec(memory_space=pltpu.MemorySpace.SMEM)
    vmem = pl.BlockSpec(memory_space=pltpu.MemorySpace.VMEM)

    out_shape = (jax.ShapeDtypeStruct((n, fout), jnp.float32),
                 jax.ShapeDtypeStruct((e, fout), jnp.float32),
                 jax.ShapeDtypeStruct((t, fout), jnp.float32))

    scratch_shapes = [
        pltpu.VMEM((n, 4 * fout), jnp.float32),   # proj1  (stacked node projection, g)
        pltpu.VMEM((e, 4 * fout), jnp.float32),   # gsrc1  (gathered src rows, g)
        pltpu.VMEM((e, 4 * fout), jnp.float32),   # gdst1  (gathered dst rows, g)
        pltpu.VMEM((e, 2 * fout), jnp.float32),   # scat1  (per-edge scatter operands, g)
        pltpu.VMEM((n, 2 * fout), jnp.float32),   # acc1   (segment-sum accumulator, g)
        pltpu.VMEM((e, 4 * fout), jnp.float32),   # proj2  (stacked node projection, lg)
        pltpu.VMEM((t, 4 * fout), jnp.float32),   # gsrc2
        pltpu.VMEM((t, 4 * fout), jnp.float32),   # gdst2
        pltpu.VMEM((t, 2 * fout), jnp.float32),   # scat2
        pltpu.VMEM((e, 2 * fout), jnp.float32),   # acc2
    ]

    kernel = functools.partial(_alignn_conv_kernel, fout=fout, residual=residual)
    return pl.pallas_call(
        kernel,
        out_shape=out_shape,
        in_specs=[smem] * 4 + [vmem] * 15,
        out_specs=(vmem, vmem, vmem),
        scratch_shapes=scratch_shapes,
        compiler_params=pltpu.CompilerParams(vmem_limit_bytes=32 * 1024 * 1024),
    )(g_src, g_dst, lg_src, lg_dst,
      x, y, z,
      p_n['gn'], p_n['bn'], p_n['ge'], p_n['be'], p_n['w_node'], p_n['w_edge'],
      p_e['gn'], p_e['bn'], p_e['ge'], p_e['be'], p_e['w_node'], p_e['w_edge'])


# ----------------------------- pure-JAX reference -----------------------------
def reference_alignn_conv(params, x, y, z, g_src, g_dst, lg_src, lg_dst, residual=False):
    def ln(v, g, b):
        m = jnp.mean(v, -1, keepdims=True)
        var = jnp.mean((v - m) ** 2, -1, keepdims=True)
        return (v - m) * jax.lax.rsqrt(var + EPS_LN) * g + b

    def egcn(p, node, edge, src, dst, n_nodes):
        fo = p['w_node'].shape[1] // 4
        xx = jax.nn.silu(ln(node, p['gn'], p['bn']))
        yy = jax.nn.silu(ln(edge, p['ge'], p['be']))
        proj = xx @ p['w_node']
        # columns = [src_gate | dst_update | dst_gate | src_update]
        e_src = proj[:, 0 * fo:1 * fo]
        bh = proj[:, 1 * fo:2 * fo]
        e_dst = proj[:, 2 * fo:3 * fo]
        src_up = proj[:, 3 * fo:4 * fo]
        y_new = e_src[src] + e_dst[dst] + yy @ p['w_edge']
        sigma = jax.nn.sigmoid(y_new)
        ssh = jax.ops.segment_sum(bh[src] * sigma, dst, num_segments=n_nodes)
        ss = jax.ops.segment_sum(sigma, dst, num_segments=n_nodes)
        h = ssh / (ss + 1e-6)
        x_out = src_up + h
        if residual:
            x_out = node + x_out
            y_new = edge + y_new
        return x_out, y_new

    x_new, y_mid = egcn(params['node_update'], x, y, g_src, g_dst, x.shape[0])
    y_new, z_new = egcn(params['edge_update'], y_mid, z, lg_src, lg_dst, y.shape[0])
    return x_new, y_new, z_new


# ----------------------------- parameter init -----------------------------
def init_params(key, fin, fout):
    ks = jax.random.split(key, 12)

    def lin(k, a, b):
        return (jax.random.normal(k, (a, b), jnp.float32) / np.sqrt(a)).astype(jnp.float32)

    def affine(kg, kb, f):
        g = (1.0 + 0.1 * jax.random.normal(kg, (1, f), jnp.float32)).astype(jnp.float32)
        b = (0.1 * jax.random.normal(kb, (1, f), jnp.float32)).astype(jnp.float32)
        return g, b

    # node_update: EdgeGatedGraphConv(node_in=fin, edge_in=fin, out=fout)
    n_gn, n_bn = affine(ks[0], ks[1], fin)
    n_ge, n_be = affine(ks[2], ks[3], fin)
    node_update = dict(gn=n_gn, bn=n_bn, ge=n_ge, be=n_be,
                       # stacked columns = [src_gate | dst_update | dst_gate | src_update]
                       w_node=lin(ks[4], fin, 4 * fout),
                       w_edge=lin(ks[5], fin, fout))

    # edge_update: EdgeGatedGraphConv(node_in=fout, edge_in=fin, out=fout)
    e_gn, e_bn = affine(ks[6], ks[7], fout)
    e_ge, e_be = affine(ks[8], ks[9], fin)
    edge_update = dict(gn=e_gn, bn=e_bn, ge=e_ge, be=e_be,
                       w_node=lin(ks[10], fout, 4 * fout),
                       w_edge=lin(ks[11], fin, fout))

    return dict(node_update=node_update, edge_update=edge_update)


# ----------------------------- main -----------------------------
if __name__ == "__main__":
    key = jax.random.PRNGKey(0)
    k_p, k_x, k_y, k_z = jax.random.split(key, 4)

    # synthetic crystal graph: 8 nodes, out-edges to (i+1)%N and (i+2)%N
    n_nodes = 8
    g_src_l, g_dst_l = [], []
    for i in range(n_nodes):
        for k in (1, 2):
            g_src_l.append(i)
            g_dst_l.append((i + k) % n_nodes)
    n_edges = len(g_src_l)  # 16

    # line graph: node = edge of g; edge (e1 -> e2) whenever dst(e1) == src(e2)
    lg_src_l, lg_dst_l = [], []
    for e1 in range(n_edges):
        for e2 in range(n_edges):
            if g_dst_l[e1] == g_src_l[e2]:
                lg_src_l.append(e1)
                lg_dst_l.append(e2)
    n_triplets = len(lg_src_l)  # 32

    g_src = jnp.array(g_src_l, jnp.int32)
    g_dst = jnp.array(g_dst_l, jnp.int32)
    lg_src = jnp.array(lg_src_l, jnp.int32)
    lg_dst = jnp.array(lg_dst_l, jnp.int32)

    x = jax.random.normal(k_x, (n_nodes, IN_FEATURES), jnp.float32)     # node features
    y = jax.random.normal(k_y, (n_edges, IN_FEATURES), jnp.float32)     # edge features
    z = jax.random.normal(k_z, (n_triplets, IN_FEATURES), jnp.float32)  # triplet features

    params = init_params(k_p, IN_FEATURES, OUT_FEATURES)

    fwd = jax.jit(alignn_conv)
    xo, yo, zo = jax.block_until_ready(fwd(params, x, y, z, g_src, g_dst, lg_src, lg_dst))

    xr, yr, zr = reference_alignn_conv(params, x, y, z, g_src, g_dst, lg_src, lg_dst)

    # Remaining kernel/reference deviation comes only from bf16 MXU inputs on the weight
    # matmuls (the segment sums, gating division and all elementwise math are f32/exact),
    # so the tolerance is tighter than the previous version's 0.1.
    for got, ref in ((xo, xr), (yo, yr), (zo, zr)):
        got_np = np.asarray(got)
        assert np.all(np.isfinite(got_np)), "non-finite kernel output"
        err = float(jnp.max(jnp.abs(got - ref)))
        assert err < 5e-2, f"kernel/reference mismatch, max abs err = {err}"

    print("KERNEL_OK")
</pallas_src>

<mosaic_0001>
module attributes {stable_mosaic.version = 11 : i64} {
  func.func @_alignn_conv_kernel(%arg0: memref<16xi32, #tpu.memory_space<smem>>, %arg1: memref<16xi32, #tpu.memory_space<smem>>, %arg2: memref<32xi32, #tpu.memory_space<smem>>, %arg3: memref<32xi32, #tpu.memory_space<smem>>, %arg4: memref<8x16xf32, #tpu.memory_space<vmem>>, %arg5: memref<16x16xf32, #tpu.memory_space<vmem>>, %arg6: memref<32x16xf32, #tpu.memory_space<vmem>>, %arg7: memref<1x16xf32, #tpu.memory_space<vmem>>, %arg8: memref<1x16xf32, #tpu.memory_space<vmem>>, %arg9: memref<1x16xf32, #tpu.memory_space<vmem>>, %arg10: memref<1x16xf32, #tpu.memory_space<vmem>>, %arg11: memref<16x64xf32, #tpu.memory_space<vmem>>, %arg12: memref<16x16xf32, #tpu.memory_space<vmem>>, %arg13: memref<1x16xf32, #tpu.memory_space<vmem>>, %arg14: memref<1x16xf32, #tpu.memory_space<vmem>>, %arg15: memref<1x16xf32, #tpu.memory_space<vmem>>, %arg16: memref<1x16xf32, #tpu.memory_space<vmem>>, %arg17: memref<16x64xf32, #tpu.memory_space<vmem>>, %arg18: memref<16x16xf32, #tpu.memory_space<vmem>>, %arg19: memref<8x16xf32, #tpu.memory_space<vmem>>, %arg20: memref<16x16xf32, #tpu.memory_space<vmem>>, %arg21: memref<32x16xf32, #tpu.memory_space<vmem>>, %arg22: memref<8x64xf32, #tpu.memory_space<vmem>>, %arg23: memref<16x64xf32, #tpu.memory_space<vmem>>, %arg24: memref<16x64xf32, #tpu.memory_space<vmem>>, %arg25: memref<16x32xf32, #tpu.memory_space<vmem>>, %arg26: memref<8x32xf32, #tpu.memory_space<vmem>>, %arg27: memref<16x64xf32, #tpu.memory_space<vmem>>, %arg28: memref<32x64xf32, #tpu.memory_space<vmem>>, %arg29: memref<32x64xf32, #tpu.memory_space<vmem>>, %arg30: memref<32x32xf32, #tpu.memory_space<vmem>>, %arg31: memref<16x32xf32, #tpu.memory_space<vmem>>) attributes {dimension_semantics = [], scalar_prefetch = 0 : i64, scratch_operands = 10 : i64, tpu.core_type = #tpu.core_type<tc>} {
    %c0 = arith.constant 0 : index
    %c0_0 = arith.constant 0 : index
    %0 = vector.load %arg4[%c0, %c0_0] : memref<8x16xf32, #tpu.memory_space<vmem>>, vector<8x16xf32>
    %c0_1 = arith.constant 0 : index
    %c0_2 = arith.constant 0 : index
    %1 = vector.load %arg5[%c0_1, %c0_2] : memref<16x16xf32, #tpu.memory_space<vmem>>, vector<16x16xf32>
    %c0_3 = arith.constant 0 : index
    %c0_4 = arith.constant 0 : index
    %2 = vector.load %arg7[%c0_3, %c0_4] : memref<1x16xf32, #tpu.memory_space<vmem>>, vector<1x16xf32>
    %c0_5 = arith.constant 0 : index
    %c0_6 = arith.constant 0 : index
    %3 = vector.load %arg8[%c0_5, %c0_6] : memref<1x16xf32, #tpu.memory_space<vmem>>, vector<1x16xf32>
    %c0_7 = arith.constant 0 : index
    %c0_8 = arith.constant 0 : index
    %4 = vector.load %arg9[%c0_7, %c0_8] : memref<1x16xf32, #tpu.memory_space<vmem>>, vector<1x16xf32>
    %c0_9 = arith.constant 0 : index
    %c0_10 = arith.constant 0 : index
    %5 = vector.load %arg10[%c0_9, %c0_10] : memref<1x16xf32, #tpu.memory_space<vmem>>, vector<1x16xf32>
    %c0_11 = arith.constant 0 : index
    %c0_12 = arith.constant 0 : index
    %6 = vector.load %arg11[%c0_11, %c0_12] : memref<16x64xf32, #tpu.memory_space<vmem>>, vector<16x64xf32>
    %7 = arith.truncf %6 : vector<16x64xf32> to vector<16x64xbf16>
    %c0_13 = arith.constant 0 : index
    %c0_14 = arith.constant 0 : index
    %8 = vector.load %arg12[%c0_13, %c0_14] : memref<16x16xf32, #tpu.memory_space<vmem>>, vector<16x16xf32>
    %9 = arith.truncf %8 : vector<16x16xf32> to vector<16x16xbf16>
    %cst = arith.constant dense<0.000000e+00> : vector<8xf32>
    %10 = vector.multi_reduction <add>, %0, %cst [1] : vector<8x16xf32> to vector<8xf32>
    %11 = vector.shape_cast %10 : vector<8xf32> to vector<8x1xf32>
    %cst_15 = arith.constant 1.600000e+01 : f32
    %12 = vector.broadcast %cst_15 : f32 to vector<8x1xf32>
    %13 = arith.divf %11, %12 : vector<8x1xf32>
    %14 = vector.broadcast %13 : vector<8x1xf32> to vector<8x16xf32>
    %15 = arith.subf %0, %14 : vector<8x16xf32>
    %16 = arith.mulf %15, %15 : vector<8x16xf32>
    %cst_16 = arith.constant dense<0.000000e+00> : vector<8xf32>
    %17 = vector.multi_reduction <add>, %16, %cst_16 [1] : vector<8x16xf32> to vector<8xf32>
    %18 = vector.shape_cast %17 : vector<8xf32> to vector<8x1xf32>
    %cst_17 = arith.constant 1.600000e+01 : f32
    %19 = vector.broadcast %cst_17 : f32 to vector<8x1xf32>
    %20 = arith.divf %18, %19 : vector<8x1xf32>
    %21 = vector.broadcast %13 : vector<8x1xf32> to vector<8x16xf32>
    %22 = arith.subf %0, %21 : vector<8x16xf32>
    %cst_18 = arith.constant 9.99999974E-6 : f32
    %23 = vector.broadcast %cst_18 : f32 to vector<8x1xf32>
    %24 = arith.addf %20, %23 : vector<8x1xf32>
    %25 = math.rsqrt %24 : vector<8x1xf32>
    %26 = vector.broadcast %25 : vector<8x1xf32> to vector<8x16xf32>
    %27 = arith.mulf %22, %26 : vector<8x16xf32>
    %28 = vector.broadcast %2 : vector<1x16xf32> to vector<8x16xf32>
    %29 = arith.mulf %27, %28 : vector<8x16xf32>
    %30 = vector.broadcast %3 : vector<1x16xf32> to vector<8x16xf32>
    %31 = arith.addf %29, %30 : vector<8x16xf32>
    %32 = arith.negf %31 : vector<8x16xf32>
    %33 = math.exp %32 : vector<8x16xf32>
    %cst_19 = arith.constant 1.000000e+00 : f32
    %34 = vector.broadcast %cst_19 : f32 to vector<8x16xf32>
    %35 = arith.addf %34, %33 : vector<8x16xf32>
    %36 = arith.divf %34, %35 : vector<8x16xf32>
    %37 = arith.mulf %31, %36 : vector<8x16xf32>
    %cst_20 = arith.constant dense<0.000000e+00> : vector<16xf32>
    %38 = vector.multi_reduction <add>, %1, %cst_20 [1] : vector<16x16xf32> to vector<16xf32>
    %39 = vector.shape_cast %38 : vector<16xf32> to vector<16x1xf32>
    %cst_21 = arith.constant 1.600000e+01 : f32
    %40 = vector.broadcast %cst_21 : f32 to vector<16x1xf32>
    %41 = arith.divf %39, %40 : vector<16x1xf32>
    %42 = vector.broadcast %41 : vector<16x1xf32> to vector<16x16xf32>
    %43 = arith.subf %1, %42 : vector<16x16xf32>
    %44 = arith.mulf %43, %43 : vector<16x16xf32>
    %cst_22 = arith.constant dense<0.000000e+00> : vector<16xf32>
    %45 = vector.multi_reduction <add>, %44, %cst_22 [1] : vector<16x16xf32> to vector<16xf32>
    %46 = vector.shape_cast %45 : vector<16xf32> to vector<16x1xf32>
    %cst_23 = arith.constant 1.600000e+01 : f32
    %47 = vector.broadcast %cst_23 : f32 to vector<16x1xf32>
    %48 = arith.divf %46, %47 : vector<16x1xf32>
    %49 = vector.broadcast %41 : vector<16x1xf32> to vector<16x16xf32>
    %50 = arith.subf %1, %49 : vector<16x16xf32>
    %cst_24 = arith.constant 9.99999974E-6 : f32
    %51 = vector.broadcast %cst_24 : f32 to vector<16x1xf32>
    %52 = arith.addf %48, %51 : vector<16x1xf32>
    %53 = math.rsqrt %52 : vector<16x1xf32>
    %54 = vector.broadcast %53 : vector<16x1xf32> to vector<16x16xf32>
    %55 = arith.mulf %50, %54 : vector<16x16xf32>
    %56 = vector.broadcast %4 : vector<1x16xf32> to vector<16x16xf32>
    %57 = arith.mulf %55, %56 : vector<16x16xf32>
    %58 = vector.broadcast %5 : vector<1x16xf32> to vector<16x16xf32>
    %59 = arith.addf %57, %58 : vector<16x16xf32>
    %60 = arith.negf %59 : vector<16x16xf32>
    %61 = math.exp %60 : vector<16x16xf32>
    %cst_25 = arith.constant 1.000000e+00 : f32
    %62 = vector.broadcast %cst_25 : f32 to vector<16x16xf32>
    %63 = arith.addf %62, %61 : vector<16x16xf32>
    %64 = arith.divf %62, %63 : vector<16x16xf32>
    %65 = arith.mulf %59, %64 : vector<16x16xf32>
    %66 = arith.truncf %37 : vector<8x16xf32> to vector<8x16xbf16>
    %cst_26 = arith.constant dense<0.000000e+00> : vector<8x64xf32>
    %67 = tpu.matmul %66, %7, %cst_26 {dimension_numbers = #tpu.dot_dimension_numbers<[1], [0], [0], [1], [0, 0, 1, 1], [], []>} : vector<8x16xbf16>, vector<16x64xbf16>, vector<8x64xf32> -> vector<8x64xf32>
    %c0_27 = arith.constant 0 : index
    %c0_28 = arith.constant 0 : index
    %68 = vector.load %arg22[%c0_27, %c0_28] : memref<8x64xf32, #tpu.memory_space<vmem>>, vector<8x64xf32>
    tpu.vector_store %arg22[%c0_27, %c0_28], %67 {strides = array<i32>} : memref<8x64xf32, #tpu.memory_space<vmem>>, vector<8x64xf32>,
    %69 = arith.truncf %65 : vector<16x16xf32> to vector<16x16xbf16>
    %cst_29 = arith.constant dense<0.000000e+00> : vector<16x16xf32>
    %70 = tpu.matmul %69, %9, %cst_29 {dimension_numbers = #tpu.dot_dimension_numbers<[1], [0], [0], [1], [0, 0, 1, 1], [], []>} : vector<16x16xbf16>, vector<16x16xbf16>, vector<16x16xf32> -> vector<16x16xf32>
    %c0_i32 = arith.constant 0 : i32
    %c16_i32 = arith.constant 16 : i32
    %71 = arith.addi %c0_i32, %c16_i32 : i32
    %c1_i32 = arith.constant 1 : i32
    scf.for %arg32 = %c0_i32 to %71 step %c1_i32  : i32 {
      %198 = arith.index_cast %arg32 : i32 to index
      %199 = memref.load %arg0[%198] : memref<16xi32, #tpu.memory_space<smem>>
      %200 = arith.index_cast %arg32 : i32 to index
      %201 = memref.load %arg1[%200] : memref<16xi32, #tpu.memory_space<smem>>
      %202 = arith.index_cast %199 : i32 to index
      %c0_107 = arith.constant 0 : index
      %203 = vector.load %arg22[%202, %c0_107] : memref<8x64xf32, #tpu.memory_space<vmem>>, vector<1x64xf32>
      %204 = arith.index_cast %arg32 : i32 to index
      %c0_108 = arith.constant 0 : index
      %205 = vector.load %arg23[%204, %c0_108] : memref<16x64xf32, #tpu.memory_space<vmem>>, vector<1x64xf32>
      tpu.vector_store %arg23[%204, %c0_108], %203 {strides = array<i32>} : memref<16x64xf32, #tpu.memory_space<vmem>>, vector<1x64xf32>,
      %206 = arith.index_cast %201 : i32 to index
      %c0_109 = arith.constant 0 : index
      %207 = vector.load %arg22[%206, %c0_109] : memref<8x64xf32, #tpu.memory_space<vmem>>, vector<1x64xf32>
      %208 = arith.index_cast %arg32 : i32 to index
      %c0_110 = arith.constant 0 : index
      %209 = vector.load %arg24[%208, %c0_110] : memref<16x64xf32, #tpu.memory_space<vmem>>, vector<1x64xf32>
      tpu.vector_store %arg24[%208, %c0_110], %207 {strides = array<i32>} : memref<16x64xf32, #tpu.memory_space<vmem>>, vector<1x64xf32>,
    }
    %c16_i32_30 = arith.constant 16 : i32
    %c0_31 = arith.constant 0 : index
    %c0_32 = arith.constant 0 : index
    %72 = vector.load %arg23[%c0_31, %c0_32] : memref<16x64xf32, #tpu.memory_space<vmem>>, vector<16x64xf32>
    %73 = vector.extract_strided_slice %72 {offsets = [0, 0], sizes = [16, 16], strides = [1, 1]} : vector<16x64xf32> to vector<16x16xf32>
    %74 = vector.extract_strided_slice %72 {offsets = [0, 16], sizes = [16, 16], strides = [1, 1]} : vector<16x64xf32> to vector<16x16xf32>
    %c0_33 = arith.constant 0 : index
    %c0_34 = arith.constant 0 : index
    %75 = vector.load %arg24[%c0_33, %c0_34] : memref<16x64xf32, #tpu.memory_space<vmem>>, vector<16x64xf32>
    %76 = vector.extract_strided_slice %75 {offsets = [0, 32], sizes = [16, 16], strides = [1, 1]} : vector<16x64xf32> to vector<16x16xf32>
    %77 = arith.addf %73, %76 : vector<16x16xf32>
    %78 = arith.addf %77, %70 : vector<16x16xf32>
    %79 = arith.negf %78 : vector<16x16xf32>
    %80 = math.exp %79 : vector<16x16xf32>
    %cst_35 = arith.constant 1.000000e+00 : f32
    %81 = vector.broadcast %cst_35 : f32 to vector<16x16xf32>
    %82 = arith.addf %81, %80 : vector<16x16xf32>
    %83 = arith.divf %81, %82 : vector<16x16xf32>
    %84 = arith.mulf %74, %83 : vector<16x16xf32>
    %c0_36 = arith.constant 0 : index
    %c0_37 = arith.constant 0 : index
    %85 = vector.load %arg25[%c0_36, %c0_37] : memref<16x32xf32, #tpu.memory_space<vmem>>, vector<16x16xf32>
    tpu.vector_store %arg25[%c0_36, %c0_37], %84 {strides = array<i32>} : memref<16x32xf32, #tpu.memory_space<vmem>>, vector<16x16xf32>,
    %c0_38 = arith.constant 0 : index
    %c16 = arith.constant 16 : index
    %86 = vector.load %arg25[%c0_38, %c16] : memref<16x32xf32, #tpu.memory_space<vmem>>, vector<16x16xf32>
    tpu.vector_store %arg25[%c0_38, %c16], %83 {strides = array<i32>} : memref<16x32xf32, #tpu.memory_space<vmem>>, vector<16x16xf32>,
    %cst_39 = arith.constant 0.000000e+00 : f32
    %87 = vector.broadcast %cst_39 : f32 to vector<8x32xf32>
    %c0_40 = arith.constant 0 : index
    %c0_41 = arith.constant 0 : index
    %88 = vector.load %arg26[%c0_40, %c0_41] : memref<8x32xf32, #tpu.memory_space<vmem>>, vector<8x32xf32>
    tpu.vector_store %arg26[%c0_40, %c0_41], %87 {strides = array<i32>} : memref<8x32xf32, #tpu.memory_space<vmem>>, vector<8x32xf32>,
    %c0_i32_42 = arith.constant 0 : i32
    %c16_i32_43 = arith.constant 16 : i32
    %89 = arith.addi %c0_i32_42, %c16_i32_43 : i32
    %c1_i32_44 = arith.constant 1 : i32
    scf.for %arg32 = %c0_i32_42 to %89 step %c1_i32_44  : i32 {
      %198 = arith.index_cast %arg32 : i32 to index
      %199 = memref.load %arg1[%198] : memref<16xi32, #tpu.memory_space<smem>>
      %200 = arith.index_cast %199 : i32 to index
      %c0_107 = arith.constant 0 : index
      %201 = vector.load %arg26[%200, %c0_107] : memref<8x32xf32, #tpu.memory_space<vmem>>, vector<1x32xf32>
      %202 = arith.index_cast %arg32 : i32 to index
      %c0_108 = arith.constant 0 : index
      %203 = vector.load %arg25[%202, %c0_108] : memref<16x32xf32, #tpu.memory_space<vmem>>, vector<1x32xf32>
      %204 = arith.addf %201, %203 : vector<1x32xf32>
      %205 = arith.index_cast %199 : i32 to index
      %c0_109 = arith.constant 0 : index
      %206 = vector.load %arg26[%205, %c0_109] : memref<8x32xf32, #tpu.memory_space<vmem>>, vector<1x32xf32>
      tpu.vector_store %arg26[%205, %c0_109], %204 {strides = array<i32>} : memref<8x32xf32, #tpu.memory_space<vmem>>, vector<1x32xf32>,
    }
    %c16_i32_45 = arith.constant 16 : i32
    %c0_46 = arith.constant 0 : index
    %c0_47 = arith.constant 0 : index
    %90 = vector.load %arg26[%c0_46, %c0_47] : memref<8x32xf32, #tpu.memory_space<vmem>>, vector<8x32xf32>
    %91 = vector.extract_strided_slice %90 {offsets = [0, 0], sizes = [8, 16], strides = [1, 1]} : vector<8x32xf32> to vector<8x16xf32>
    %92 = vector.extract_strided_slice %90 {offsets = [0, 16], sizes = [8, 16], strides = [1, 1]} : vector<8x32xf32> to vector<8x16xf32>
    %cst_48 = arith.constant 9.99999997E-7 : f32
    %93 = vector.broadcast %cst_48 : f32 to vector<8x16xf32>
    %94 = arith.addf %92, %93 : vector<8x16xf32>
    %95 = arith.divf %91, %94 : vector<8x16xf32>
    %96 = vector.extract_strided_slice %67 {offsets = [0, 48], sizes = [8, 16], strides = [1, 1]} : vector<8x64xf32> to vector<8x16xf32>
    %97 = arith.addf %96, %95 : vector<8x16xf32>
    %c0_49 = arith.constant 0 : index
    %c0_50 = arith.constant 0 : index
    %98 = vector.load %arg6[%c0_49, %c0_50] : memref<32x16xf32, #tpu.memory_space<vmem>>, vector<32x16xf32>
    %c0_51 = arith.constant 0 : index
    %c0_52 = arith.constant 0 : index
    %99 = vector.load %arg13[%c0_51, %c0_52] : memref<1x16xf32, #tpu.memory_space<vmem>>, vector<1x16xf32>
    %c0_53 = arith.constant 0 : index
    %c0_54 = arith.constant 0 : index
    %100 = vector.load %arg14[%c0_53, %c0_54] : memref<1x16xf32, #tpu.memory_space<vmem>>, vector<1x16xf32>
    %c0_55 = arith.constant 0 : index
    %c0_56 = arith.constant 0 : index
    %101 = vector.load %arg15[%c0_55, %c0_56] : memref<1x16xf32, #tpu.memory_space<vmem>>, vector<1x16xf32>
    %c0_57 = arith.constant 0 : index
    %c0_58 = arith.constant 0 : index
    %102 = vector.load %arg16[%c0_57, %c0_58] : memref<1x16xf32, #tpu.memory_space<vmem>>, vector<1x16xf32>
    %c0_59 = arith.constant 0 : index
    %c0_60 = arith.constant 0 : index
    %103 = vector.load %arg17[%c0_59, %c0_60] : memref<16x64xf32, #tpu.memory_space<vmem>>, vector<16x64xf32>
    %104 = arith.truncf %103 : vector<16x64xf32> to vector<16x64xbf16>
    %c0_61 = arith.constant 0 : index
    %c0_62 = arith.constant 0 : index
    %105 = vector.load %arg18[%c0_61, %c0_62] : memref<16x16xf32, #tpu.memory_space<vmem>>, vector<16x16xf32>
    %106 = arith.truncf %105 : vector<16x16xf32> to vector<16x16xbf16>
    %cst_63 = arith.constant dense<0.000000e+00> : vector<16xf32>
    %107 = vector.multi_reduction <add>, %78, %cst_63 [1] : vector<16x16xf32> to vector<16xf32>
    %108 = vector.shape_cast %107 : vector<16xf32> to vector<16x1xf32>
    %cst_64 = arith.constant 1.600000e+01 : f32
    %109 = vector.broadcast %cst_64 : f32 to vector<16x1xf32>
    %110 = arith.divf %108, %109 : vector<16x1xf32>
    %111 = vector.broadcast %110 : vector<16x1xf32> to vector<16x16xf32>
    %112 = arith.subf %78, %111 : vector<16x16xf32>
    %113 = arith.mulf %112, %112 : vector<16x16xf32>
    %cst_65 = arith.constant dense<0.000000e+00> : vector<16xf32>
    %114 = vector.multi_reduction <add>, %113, %cst_65 [1] : vector<16x16xf32> to vector<16xf32>
    %115 = vector.shape_cast %114 : vector<16xf32> to vector<16x1xf32>
    %cst_66 = arith.constant 1.600000e+01 : f32
    %116 = vector.broadcast %cst_66 : f32 to vector<16x1xf32>
    %117 = arith.divf %115, %116 : vector<16x1xf32>
    %118 = vector.broadcast %110 : vector<16x1xf32> to vector<16x16xf32>
    %119 = arith.subf %78, %118 : vector<16x16xf32>
    %cst_67 = arith.constant 9.99999974E-6 : f32
    %120 = vector.broadcast %cst_67 : f32 to vector<16x1xf32>
    %121 = arith.addf %117, %120 : vector<16x1xf32>
    %122 = math.rsqrt %121 : vector<16x1xf32>
    %123 = vector.broadcast %122 : vector<16x1xf32> to vector<16x16xf32>
    %124 = arith.mulf %119, %123 : vector<16x16xf32>
    %125 = vector.broadcast %99 : vector<1x16xf32> to vector<16x16xf32>
    %126 = arith.mulf %124, %125 : vector<16x16xf32>
    %127 = vector.broadcast %100 : vector<1x16xf32> to vector<16x16xf32>
    %128 = arith.addf %126, %127 : vector<16x16xf32>
    %129 = arith.negf %128 : vector<16x16xf32>
    %130 = math.exp %129 : vector<16x16xf32>
    %cst_68 = arith.constant 1.000000e+00 : f32
    %131 = vector.broadcast %cst_68 : f32 to vector<16x16xf32>
    %132 = arith.addf %131, %130 : vector<16x16xf32>
    %133 = arith.divf %131, %132 : vector<16x16xf32>
    %134 = arith.mulf %128, %133 : vector<16x16xf32>
    %cst_69 = arith.constant dense<0.000000e+00> : vector<32xf32>
    %135 = vector.multi_reduction <add>, %98, %cst_69 [1] : vector<32x16xf32> to vector<32xf32>
    %136 = vector.shape_cast %135 : vector<32xf32> to vector<32x1xf32>
    %cst_70 = arith.constant 1.600000e+01 : f32
    %137 = vector.broadcast %cst_70 : f32 to vector<32x1xf32>
    %138 = arith.divf %136, %137 : vector<32x1xf32>
    %139 = vector.broadcast %138 : vector<32x1xf32> to vector<32x16xf32>
    %140 = arith.subf %98, %139 : vector<32x16xf32>
    %141 = arith.mulf %140, %140 : vector<32x16xf32>
    %cst_71 = arith.constant dense<0.000000e+00> : vector<32xf32>
    %142 = vector.multi_reduction <add>, %141, %cst_71 [1] : vector<32x16xf32> to vector<32xf32>
    %143 = vector.shape_cast %142 : vector<32xf32> to vector<32x1xf32>
    %cst_72 = arith.constant 1.600000e+01 : f32
    %144 = vector.broadcast %cst_72 : f32 to vector<32x1xf32>
    %145 = arith.divf %143, %144 : vector<32x1xf32>
    %146 = vector.broadcast %138 : vector<32x1xf32> to vector<32x16xf32>
    %147 = arith.subf %98, %146 : vector<32x16xf32>
    %cst_73 = arith.constant 9.99999974E-6 : f32
    %148 = vector.broadcast %cst_73 : f32 to vector<32x1xf32>
    %149 = arith.addf %145, %148 : vector<32x1xf32>
    %150 = math.rsqrt %149 : vector<32x1xf32>
    %151 = vector.broadcast %150 : vector<32x1xf32> to vector<32x16xf32>
    %152 = arith.mulf %147, %151 : vector<32x16xf32>
    %153 = vector.broadcast %101 : vector<1x16xf32> to vector<32x16xf32>
    %154 = arith.mulf %152, %153 : vector<32x16xf32>
    %155 = vector.broadcast %102 : vector<1x16xf32> to vector<32x16xf32>
    %156 = arith.addf %154, %155 : vector<32x16xf32>
    %157 = arith.negf %156 : vector<32x16xf32>
    %158 = math.exp %157 : vector<32x16xf32>
    %cst_74 = arith.constant 1.000000e+00 : f32
    %159 = vector.broadcast %cst_74 : f32 to vector<32x16xf32>
    %160 = arith.addf %159, %158 : vector<32x16xf32>
    %161 = arith.divf %159, %160 : vector<32x16xf32>
    %162 = arith.mulf %156, %161 : vector<32x16xf32>
    %163 = arith.truncf %134 : vector<16x16xf32> to vector<16x16xbf16>
    %cst_75 = arith.constant dense<0.000000e+00> : vector<16x64xf32>
    %164 = tpu.matmul %163, %104, %cst_75 {dimension_numbers = #tpu.dot_dimension_numbers<[1], [0], [0], [1], [0, 0, 1, 1], [], []>} : vector<16x16xbf16>, vector<16x64xbf16>, vector<16x64xf32> -> vector<16x64xf32>
    %c0_76 = arith.constant 0 : index
    %c0_77 = arith.constant 0 : index
    %165 = vector.load %arg27[%c0_76, %c0_77] : memref<16x64xf32, #tpu.memory_space<vmem>>, vector<16x64xf32>
    tpu.vector_store %arg27[%c0_76, %c0_77], %164 {strides = array<i32>} : memref<16x64xf32, #tpu.memory_space<vmem>>, vector<16x64xf32>,
    %166 = arith.truncf %162 : vector<32x16xf32> to vector<32x16xbf16>
    %cst_78 = arith.constant dense<0.000000e+00> : vector<32x16xf32>
    %167 = tpu.matmul %166, %106, %cst_78 {dimension_numbers = #tpu.dot_dimension_numbers<[1], [0], [0], [1], [0, 0, 1, 1], [], []>} : vector<32x16xbf16>, vector<16x16xbf16>, vector<32x16xf32> -> vector<32x16xf32>
    %c0_i32_79 = arith.constant 0 : i32
    %c32_i32 = arith.constant 32 : i32
    %168 = arith.addi %c0_i32_79, %c32_i32 : i32
    %c1_i32_80 = arith.constant 1 : i32
    scf.for %arg32 = %c0_i32_79 to %168 step %c1_i32_80  : i32 {
      %198 = arith.index_cast %arg32 : i32 to index
      %199 = memref.load %arg2[%198] : memref<32xi32, #tpu.memory_space<smem>>
      %200 = arith.index_cast %arg32 : i32 to index
      %201 = memref.load %arg3[%200] : memref<32xi32, #tpu.memory_space<smem>>
      %202 = arith.index_cast %199 : i32 to index
      %c0_107 = arith.constant 0 : index
      %203 = vector.load %arg27[%202, %c0_107] : memref<16x64xf32, #tpu.memory_space<vmem>>, vector<1x64xf32>
      %204 = arith.index_cast %arg32 : i32 to index
      %c0_108 = arith.constant 0 : index
      %205 = vector.load %arg28[%204, %c0_108] : memref<32x64xf32, #tpu.memory_space<vmem>>, vector<1x64xf32>
      tpu.vector_store %arg28[%204, %c0_108], %203 {strides = array<i32>} : memref<32x64xf32, #tpu.memory_space<vmem>>, vector<1x64xf32>,
      %206 = arith.index_cast %201 : i32 to index
      %c0_109 = arith.constant 0 : index
      %207 = vector.load %arg27[%206, %c0_109] : memref<16x64xf32, #tpu.memory_space<vmem>>, vector<1x64xf32>
      %208 = arith.index_cast %arg32 : i32 to index
      %c0_110 = arith.constant 0 : index
      %209 = vector.load %arg29[%208, %c0_110] : memref<32x64xf32, #tpu.memory_space<vmem>>, vector<1x64xf32>
      tpu.vector_store %arg29[%208, %c0_110], %207 {strides = array<i32>} : memref<32x64xf32, #tpu.memory_space<vmem>>, vector<1x64xf32>,
    }
    %c32_i32_81 = arith.constant 32 : i32
    %c0_82 = arith.constant 0 : index
    %c0_83 = arith.constant 0 : index
    %169 = vector.load %arg28[%c0_82, %c0_83] : memref<32x64xf32, #tpu.memory_space<vmem>>, vector<32x64xf32>
    %170 = vector.extract_strided_slice %169 {offsets = [0, 0], sizes = [32, 16], strides = [1, 1]} : vector<32x64xf32> to vector<32x16xf32>
    %171 = vector.extract_strided_slice %169 {offsets = [0, 16], sizes = [32, 16], strides = [1, 1]} : vector<32x64xf32> to vector<32x16xf32>
    %c0_84 = arith.constant 0 : index
    %c0_85 = arith.constant 0 : index
    %172 = vector.load %arg29[%c0_84, %c0_85] : memref<32x64xf32, #tpu.memory_space<vmem>>, vector<32x64xf32>
    %173 = vector.extract_strided_slice %172 {offsets = [0, 32], sizes = [32, 16], strides = [1, 1]} : vector<32x64xf32> to vector<32x16xf32>
    %174 = arith.addf %170, %173 : vector<32x16xf32>
    %175 = arith.addf %174, %167 : vector<32x16xf32>
    %176 = arith.negf %175 : vector<32x16xf32>
    %177 = math.exp %176 : vector<32x16xf32>
    %cst_86 = arith.constant 1.000000e+00 : f32
    %178 = vector.broadcast %cst_86 : f32 to vector<32x16xf32>
    %179 = arith.addf %178, %177 : vector<32x16xf32>
    %180 = arith.divf %178, %179 : vector<32x16xf32>
    %181 = arith.mulf %171, %180 : vector<32x16xf32>
    %c0_87 = arith.constant 0 : index
    %c0_88 = arith.constant 0 : index
    %182 = vector.load %arg30[%c0_87, %c0_88] : memref<32x32xf32, #tpu.memory_space<vmem>>, vector<32x16xf32>
    tpu.vector_store %arg30[%c0_87, %c0_88], %181 {strides = array<i32>} : memref<32x32xf32, #tpu.memory_space<vmem>>, vector<32x16xf32>,
    %c0_89 = arith.constant 0 : index
    %c16_90 = arith.constant 16 : index
    %183 = vector.load %arg30[%c0_89, %c16_90] : memref<32x32xf32, #tpu.memory_space<vmem>>, vector<32x16xf32>
    tpu.vector_store %arg30[%c0_89, %c16_90], %180 {strides = array<i32>} : memref<32x32xf32, #tpu.memory_space<vmem>>, vector<32x16xf32>,
    %cst_91 = arith.constant 0.000000e+00 : f32
    %184 = vector.broadcast %cst_91 : f32 to vector<16x32xf32>
    %c0_92 = arith.constant 0 : index
    %c0_93 = arith.constant 0 : index
    %185 = vector.load %arg31[%c0_92, %c0_93] : memref<16x32xf32, #tpu.memory_space<vmem>>, vector<16x32xf32>
    tpu.vector_store %arg31[%c0_92, %c0_93], %184 {strides = array<i32>} : memref<16x32xf32, #tpu.memory_space<vmem>>, vector<16x32xf32>,
    %c0_i32_94 = arith.constant 0 : i32
    %c32_i32_95 = arith.constant 32 : i32
    %186 = arith.addi %c0_i32_94, %c32_i32_95 : i32
    %c1_i32_96 = arith.constant 1 : i32
    scf.for %arg32 = %c0_i32_94 to %186 step %c1_i32_96  : i32 {
      %198 = arith.index_cast %arg32 : i32 to index
      %199 = memref.load %arg3[%198] : memref<32xi32, #tpu.memory_space<smem>>
      %200 = arith.index_cast %199 : i32 to index
      %c0_107 = arith.constant 0 : index
      %201 = vector.load %arg31[%200, %c0_107] : memref<16x32xf32, #tpu.memory_space<vmem>>, vector<1x32xf32>
      %202 = arith.index_cast %arg32 : i32 to index
      %c0_108 = arith.constant 0 : index
      %203 = vector.load %arg30[%202, %c0_108] : memref<32x32xf32, #tpu.memory_space<vmem>>, vector<1x32xf32>
      %204 = arith.addf %201, %203 : vector<1x32xf32>
      %205 = arith.index_cast %199 : i32 to index
      %c0_109 = arith.constant 0 : index
      %206 = vector.load %arg31[%205, %c0_109] : memref<16x32xf32, #tpu.memory_space<vmem>>, vector<1x32xf32>
      tpu.vector_store %arg31[%205, %c0_109], %204 {strides = array<i32>} : memref<16x32xf32, #tpu.memory_space<vmem>>, vector<1x32xf32>,
    }
    %c32_i32_97 = arith.constant 32 : i32
    %c0_98 = arith.constant 0 : index
    %c0_99 = arith.constant 0 : index
    %187 = vector.load %arg31[%c0_98, %c0_99] : memref<16x32xf32, #tpu.memory_space<vmem>>, vector<16x32xf32>
    %188 = vector.extract_strided_slice %187 {offsets = [0, 0], sizes = [16, 16], strides = [1, 1]} : vector<16x32xf32> to vector<16x16xf32>
    %189 = vector.extract_strided_slice %187 {offsets = [0, 16], sizes = [16, 16], strides = [1, 1]} : vector<16x32xf32> to vector<16x16xf32>
    %cst_100 = arith.constant 9.99999997E-7 : f32
    %190 = vector.broadcast %cst_100 : f32 to vector<16x16xf32>
    %191 = arith.addf %189, %190 : vector<16x16xf32>
    %192 = arith.divf %188, %191 : vector<16x16xf32>
    %193 = vector.extract_strided_slice %164 {offsets = [0, 48], sizes = [16, 16], strides = [1, 1]} : vector<16x64xf32> to vector<16x16xf32>
    %194 = arith.addf %193, %192 : vector<16x16xf32>
    %c0_101 = arith.constant 0 : index
    %c0_102 = arith.constant 0 : index
    %195 = vector.load %arg19[%c0_101, %c0_102] : memref<8x16xf32, #tpu.memory_space<vmem>>, vector<8x16xf32>
    tpu.vector_store %arg19[%c0_101, %c0_102], %97 {strides = array<i32>} : memref<8x16xf32, #tpu.memory_space<vmem>>, vector<8x16xf32>,
    %c0_103 = arith.constant 0 : index
    %c0_104 = arith.constant 0 : index
    %196 = vector.load %arg20[%c0_103, %c0_104] : memref<16x16xf32, #tpu.memory_space<vmem>>, vector<16x16xf32>
    tpu.vector_store %arg20[%c0_103, %c0_104], %194 {strides = array<i32>} : memref<16x16xf32, #tpu.memory_space<vmem>>, vector<16x16xf32>,
    %c0_105 = arith.constant 0 : index
    %c0_106 = arith.constant 0 : index
    %197 = vector.load %arg21[%c0_105, %c0_106] : memref<32x16xf32, #tpu.memory_space<vmem>>, vector<32x16xf32>
    tpu.vector_store %arg21[%c0_105, %c0_106], %175 {strides = array<i32>} : memref<32x16xf32, #tpu.memory_space<vmem>>, vector<32x16xf32>,
    return
  }
}

</mosaic_0001>

<bundles_post_ra>
// kernel: alignn_conv.1
= control target key start
LH: loop header
LB: loop body
LE: loop exit
PB: predicated region body
PF: predicated region fallthrough
CT: control target
= control target key end

     0   :  { %s1903_s0 = inlined_call_operand.vmem [shape: s32[16], index: 0, kind: input, shape index: {}]   ;;  %s1904_s1 = inlined_call_operand.vmem [shape: s32[16], index: 1, kind: input, shape index: {}]   ;;  %s1905_s2 = inlined_call_operand.vmem [shape: s32[32], index: 2, kind: input, shape index: {}]   ;;  %s1906_s3 = inlined_call_operand.vmem [shape: s32[32], index: 3, kind: input, shape index: {}]   ;;  %s1907_s4 = inlined_call_operand.vmem [shape: f32[8,16], index: 4, kind: input, shape index: {}]   ;;  %s1908_s5 = inlined_call_operand.vmem [shape: f32[16,16], index: 5, kind: input, shape index: {}]   ;;  %s1909_s6 = inlined_call_operand.vmem [shape: f32[32,16], index: 6, kind: input, shape index: {}]   ;;  %s1910_s7 = inlined_call_operand.vmem [shape: f32[1,16], index: 7, kind: input, shape index: {}]   ;;  %s1911_s8 = inlined_call_operand.vmem [shape: f32[1,16], index: 8, kind: input, shape index: {}]   ;;  %s1912_s9 = inlined_call_operand.vmem [shape: f32[1,16], index: 9, kind: input, shape index: {}]   ;;  %s1913_s10 = inlined_call_operand.vmem [shape: f32[1,16], index: 10, kind: input, shape index: {}]   ;;  %s1914_s11 = inlined_call_operand.vmem [shape: f32[16,64], index: 11, kind: input, shape index: {}]   ;;  %s1915_s12 = inlined_call_operand.vmem [shape: f32[16,16], index: 12, kind: input, shape index: {}]   ;;  %s1916_s13 = inlined_call_operand.hbm [shape: f32[1,16], index: 13, kind: input, shape index: {}]   ;;  %s1917_s14 = inlined_call_operand.hbm [shape: f32[1,16], index: 14, kind: input, shape index: {}]   ;;  %s1918_s15 = inlined_call_operand.hbm [shape: f32[1,16], index: 15, kind: input, shape index: {}]   ;;  %s1919_s16 = inlined_call_operand.hbm [shape: f32[1,16], index: 16, kind: input, shape index: {}]   ;;  %s1920_s17 = inlined_call_operand.vmem [shape: f32[16,64], index: 17, kind: input, shape index: {}]   ;;  %s1921_s18 = inlined_call_operand.hbm [shape: f32[16,16], index: 18, kind: input, shape index: {}]   ;;  %s1922_s19 = inlined_call_operand.hbm [shape: f32[8,16], index: 19, kind: output, shape index: {0}]   ;;  %s1923_s20 = inlined_call_operand.hbm [shape: f32[16,16], index: 20, kind: output, shape index: {1}]   ;;  %s1924_s21 = inlined_call_operand.vmem [shape: f32[32,16], index: 21, kind: output, shape index: {2}]  }
   0x1   :  { %1926 = sst [smem:[#allocation39_spill]] %s1903_s0 }
   0x2   :  { %1927 = sst [smem:[#allocation40_spill]] %s1904_s1 }
   0x3   :  { %1928 = sst [smem:[#allocation41_spill]] %s1905_s2 }
   0x4   :  { %1929 = sst [smem:[#allocation42_spill]] %s1906_s3 }
   0x5   :  { %1930 = sst [smem:[#allocation43_spill]] %s1907_s4 }
   0x6   :  { %1931 = sst [smem:[#allocation44_spill]] %s1908_s5 }
   0x7   :  { %27 = vsyncpa [#allocation15], 0 }
   0x8   :  { %28 = vsyncpa [#allocation17], 0 }
   0x9   :  { %29 = vsyncpa [#allocation20], 0 }
   0xa   :  { %30 = vsyncpa [#allocation13], 0 }
   0xb   :  { %31 = vsyncpa [#allocation23], 0 }
   0xc   :  { %32 = vsyncpa [#allocation26], 0 }
   0xd   :  { %33 = vsyncpa [#allocation14], 0  ;;  %s1932_s26 = sld [smem:[#allocation40_spill]] }
  0x13   :  { %s51_s27 = sshll.u32 %s1932_s26, 4  ;;  %s52_s27 = int_to_ptr.vmem [resolvable:$true] %s51_s27 }
  0x14   :  { %34 = vsyncpa [#allocation30], 0  ;;  %s1190_s3 = scalar_lea.vmem %s52_s27, 16  ;;  %p1195_p1 = scmp.lt.s32.totalorder %s52_s27, %s52_s27 }
  0x15   :  { %p1191_p0 = scmp.ne.s32.totalorder %s52_s27, %s1190_s3  ;;  %p1196_p2 = scmp.lt.s32.totalorder %s1190_s3, %s1190_s3 }
  0x17   :  { %p1197_p3 = por %p1196_p2, %p1195_p1 }
  0x19   :  { %p1198_p4 = pnand %p1197_p3, %p1191_p0 }
  0x1b   :  { %1201 = shalt.err (!%p1198_p4)
}
  0x1c   :  { %s1440_s28 = smov [#allocation16]   ;;  %s1441_s29 = smov [#allocation22]  }
  0x1d   :  { %54 = dma.vmem_to_smem %s52_s27, 16, %s1440_s28, [#allocation17]  }
  0x1e   :  { %s109_s0 = sshll.u32 %s1441_s29, 4  ;;  %s1442_s4 = smov [#allocation25]   ;;  %s110_s0 = int_to_ptr.vmem [resolvable:$true] %s109_s0 }
  0x1f   :  { %s129_s30 = sshll.u32 %s1442_s4, 4  ;;  %s1202_s23 = scalar_lea.hbm %s1917_s14, 16  ;;  %s130_s30 = int_to_ptr.vmem [resolvable:$true] %s129_s30 }
  0x20   :  { %p1203_p5 = scmp.ne.s32.totalorder %s1917_s14, %s1202_s23  ;;  %p1206_p6 = scmp.lt.u32.totalorder %s1202_s23, %s1917_s14 }
  0x22   :  { %p1208_p7 = pnand %p1206_p6, %p1203_p5 }
  0x24   :  { %1211 = shalt.err (!%p1208_p7)
}
  0x25   :  { %s1212_s26 = scalar_lea.vmem %s110_s0, 16  ;;  %s1216_s27 = scalar_lea.vmem %s110_s0, 32 }
  0x26   :  { %p1213_p8 = scmp.ne.s32.totalorder %s110_s0, %s1212_s26  ;;  %p1217_p9 = scmp.lt.s32.totalorder %s110_s0, %s110_s0 }
  0x27   :  { %p1218_p10 = scmp.lt.s32.totalorder %s1216_s27, %s1212_s26 }
  0x29   :  { %p1219_p11 = por %p1218_p10, %p1217_p9 }
  0x2b   :  { %p1220_p12 = pnand %p1219_p11, %p1213_p8 }
  0x2d   :  { %1223 = shalt.err (!%p1220_p12)
}
  0x2e   :  { %112 = dma.hbm_to_vmem [thread:$0]  %s1917_s14, 16, %s110_s0, [#allocation23]  }
  0x2f   :  { %s1933_s5 = sld [smem:[#allocation39_spill]]  ;;  %s1224_s24 = scalar_lea.hbm %s1919_s16, 16 }
  0x30   :  { %p1225_p13 = scmp.ne.s32.totalorder %s1919_s16, %s1224_s24  ;;  %p1228_p0 = scmp.lt.u32.totalorder %s1224_s24, %s1919_s16 }
  0x32   :  { %p1230_p1 = pnand %p1228_p0, %p1225_p13 }
  0x35   :  { %s41_s22 = sshll.u32 %s1933_s5, 4  ;;  %s42_s22 = int_to_ptr.vmem [resolvable:$true] %s41_s22 }
  0x36   :  { %1233 = shalt.err (!%p1230_p1)
}
  0x37   :  { %s1234_s14 = scalar_lea.vmem %s130_s30, 16  ;;  %s1238_s0 = scalar_lea.vmem %s130_s30, 32 }
  0x38   :  { %p1235_p2 = scmp.ne.s32.totalorder %s130_s30, %s1234_s14  ;;  %p1239_p3 = scmp.lt.s32.totalorder %s130_s30, %s130_s30 }
  0x39   :  { %p1240_p4 = scmp.lt.s32.totalorder %s1238_s0, %s1234_s14 }
  0x3b   :  { %p1241_p5 = por %p1240_p4, %p1239_p3 }
  0x3d   :  { %p1242_p6 = pnand %p1241_p5, %p1235_p2 }
  0x3f   :  { %1245 = shalt.err (!%p1242_p6)
}
  0x40   :  { %132 = dma.hbm_to_vmem [thread:$0]  %s1919_s16, 16, %s130_s30, [#allocation26]  }
  0x41   :  { %s1246_s29 = scalar_lea.vmem %s42_s22, 16  ;;  %p1251_p8 = scmp.lt.s32.totalorder %s42_s22, %s42_s22 }
  0x42   :  { %p1247_p7 = scmp.ne.s32.totalorder %s42_s22, %s1246_s29  ;;  %p1252_p9 = scmp.lt.s32.totalorder %s1246_s29, %s1246_s29 }
  0x44   :  { %p1253_p10 = por %p1252_p9, %p1251_p8 }
  0x46   :  { %p1254_p11 = pnand %p1253_p10, %p1247_p7 }
  0x48   :  { %1257 = shalt.err (!%p1254_p11)
}
  0x49   :  { %s1443_s4 = smov [#allocation12]   ;;  %s1934_s1 = sld [smem:[#allocation41_spill]] }
  0x4a   :  { %44 = dma.vmem_to_smem %s42_s22, 16, %s1443_s4, [#allocation15]  }
  0x4b   :  { %s1935_s26 = sld [smem:[#allocation42_spill]] }
  0x4f   :  { %s61_s24 = sshll.u32 %s1934_s1, 4  ;;  %s62_s24 = int_to_ptr.vmem [resolvable:$true] %s61_s24 }
  0x50   :  { %s1258_s16 = scalar_lea.vmem %s62_s24, 16  ;;  %p1263_p13 = scmp.lt.s32.totalorder %s62_s24, %s62_s24 }
  0x51   :  { %s71_s27 = sshll.u32 %s1935_s26, 4  ;;  %p1259_p12 = scmp.ne.s32.totalorder %s62_s24, %s1258_s16  ;;  %s72_s27 = int_to_ptr.vmem [resolvable:$true] %s71_s27 }
  0x52   :  { %p1264_p0 = scmp.lt.s32.totalorder %s1258_s16, %s1258_s16 }
  0x54   :  { %p1265_p1 = por %p1264_p0, %p1263_p13 }
  0x56   :  { %p1266_p2 = pnand %p1265_p1, %p1259_p12 }
  0x58   :  { %1269 = shalt.err (!%p1266_p2)
}
  0x59   :  { %s1444_s30 = smov [#allocation18]   ;;  %s1270_s22 = scalar_lea.vmem %s72_s27, 16 }
  0x5a   :  { %64 = dma.vmem_to_smem %s62_s24, 16, %s1444_s30, [#allocation17]  }
  0x5b   :  { %p1271_p3 = scmp.ne.s32.totalorder %s72_s27, %s1270_s22  ;;  %p1275_p4 = scmp.lt.s32.totalorder %s72_s27, %s72_s27 }
  0x5c   :  { %p1276_p5 = scmp.lt.s32.totalorder %s1270_s22, %s1270_s22 }
  0x5e   :  { %p1277_p6 = por %p1276_p5, %p1275_p4 }
  0x60   :  { %p1278_p7 = pnand %p1277_p6, %p1271_p3 }
  0x62   :  { %1281 = shalt.err (!%p1278_p7)
}
  0x63   :  { %s1445_s14 = smov [#allocation19]   ;;  %s1446_s0 = smov [#allocation21]  }
  0x64   :  { %74 = dma.vmem_to_smem %s72_s27, 16, %s1445_s14, [#allocation20]  }
  0x65   :  { %s99_s3 = sshll.u32 %s1446_s0, 4  ;;  %s1447_s28 = smov [#allocation24]   ;;  %s100_s3 = int_to_ptr.vmem [resolvable:$true] %s99_s3 }
  0x66   :  { %s119_s29 = sshll.u32 %s1447_s28, 4  ;;  %s1282_s23 = scalar_lea.hbm %s1916_s13, 16  ;;  %s120_s29 = int_to_ptr.vmem [resolvable:$true] %s119_s29 }
  0x67   :  { %p1283_p8 = scmp.ne.s32.totalorder %s1916_s13, %s1282_s23  ;;  %p1286_p9 = scmp.lt.u32.totalorder %s1282_s23, %s1916_s13 }
  0x69   :  { %p1288_p10 = pnand %p1286_p9, %p1283_p8 }
  0x6b   :  { %1291 = shalt.err (!%p1288_p10)
}
  0x6c   :  { %s1292_s26 = scalar_lea.vmem %s100_s3, 16  ;;  %s1296_s27 = scalar_lea.vmem %s100_s3, 32 }
  0x6d   :  { %p1293_p11 = scmp.ne.s32.totalorder %s100_s3, %s1292_s26  ;;  %p1297_p12 = scmp.lt.s32.totalorder %s100_s3, %s100_s3 }
  0x6e   :  { %p1298_p13 = scmp.lt.s32.totalorder %s1296_s27, %s1292_s26 }
  0x70   :  { %p1299_p0 = por %p1298_p13, %p1297_p12 }
  0x72   :  { %p1300_p1 = pnand %p1299_p0, %p1293_p11 }
  0x74   :  { %1303 = shalt.err (!%p1300_p1)
}
  0x75   :  { %102 = dma.hbm_to_vmem [thread:$0]  %s1916_s13, 16, %s100_s3, [#allocation13]  }
  0x76   :  { %s1304_s0 = scalar_lea.hbm %s1918_s15, 16 }
  0x77   :  { %p1305_p2 = scmp.ne.s32.totalorder %s1918_s15, %s1304_s0  ;;  %p1308_p3 = scmp.lt.u32.totalorder %s1304_s0, %s1918_s15 }
  0x79   :  { %p1310_p4 = pnand %p1308_p3, %p1305_p2 }
  0x7b   :  { %1313 = shalt.err (!%p1310_p4)
}
  0x7c   :  { %s1314_s1 = scalar_lea.vmem %s120_s29, 16  ;;  %s1318_s24 = scalar_lea.vmem %s120_s29, 32 }
  0x7d   :  { %p1315_p5 = scmp.ne.s32.totalorder %s120_s29, %s1314_s1  ;;  %p1319_p6 = scmp.lt.s32.totalorder %s120_s29, %s120_s29 }
  0x7e   :  { %p1320_p7 = scmp.lt.s32.totalorder %s1318_s24, %s1314_s1 }
  0x80   :  { %p1321_p8 = por %p1320_p7, %p1319_p6 }
  0x82   :  { %p1322_p9 = pnand %p1321_p8, %p1315_p5 }
  0x84   :  { %1325 = shalt.err (!%p1322_p9)
}
  0x85   :  { %122 = dma.hbm_to_vmem [thread:$0]  %s1918_s15, 16, %s120_s29, [#allocation23]  }
  0x86   :  { %s1448_s2 = smov [#allocation27]   ;;  %s1326_s16 = scalar_lea.hbm %s1921_s18, 256 }
  0x87   :  { %s140_s25 = sshll.u32 %s1448_s2, 4  ;;  %p1327_p10 = scmp.ne.s32.totalorder %s1921_s18, %s1326_s16  ;;  %s141_s25 = int_to_ptr.vmem [resolvable:$true] %s140_s25 }
  0x88   :  { %p1330_p11 = scmp.lt.u32.totalorder %s1326_s16, %s1921_s18 }
  0x8a   :  { %p1332_p12 = pnand %p1330_p11, %p1327_p10 }
  0x8c   :  { %1335 = shalt.err (!%p1332_p12)
}
  0x8d   :  { %s1336_s28 = scalar_lea.vmem %s141_s25, 256  ;;  %p1341_p0 = scmp.lt.s32.totalorder %s141_s25, %s141_s25 }
  0x8e   :  { %p1337_p13 = scmp.ne.s32.totalorder %s141_s25, %s1336_s28  ;;  %p1342_p1 = scmp.lt.s32.totalorder %s1336_s28, %s1336_s28 }
  0x90   :  { %p1343_p2 = por %p1342_p1, %p1341_p0 }
  0x92   :  { %p1344_p3 = pnand %p1343_p2, %p1337_p13 }
  0x94   :  { %1347 = shalt.err (!%p1344_p3)
}
  0x95   :  { %s1449_s15 = smov 128   ;;  %s1450_s29 = smov 8  }
  0x96   :  { %146 = dma.hbm_to_vmem [thread:$0]  %s1921_s18, 256, %s141_s25, [#allocation26], %s1449_s15, %s1449_s15, %s1450_s29  }
  0x97   :  { %1408 = dma.done.wait [#allocation15], 16  }
  0x98   :  { %1409 = vsyncadd [#allocation15], 4294967280 }
  0x99   :  { %1410 = dma.done.wait [#allocation17], 32  }
  0x9a   :  { %1411 = vsyncadd [#allocation17], 4294967264 }
  0x9b   :  { %1412 = dma.done.wait [#allocation20], 16  }
  0x9c   :  { %1413 = vsyncadd [#allocation20], 4294967280 }
  0x9d   :  { %1414 = dma.done.wait [#allocation13], 16  }
  0x9e   :  { %1415 = vsyncadd [#allocation13], 4294967280 }
  0x9f   :  { %1416 = dma.done.wait [#allocation23], 32  }
  0xa0   :  { %1417 = vsyncadd [#allocation23], 4294967264 }
  0xa1   :  { %1418 = dma.done.wait [#allocation26], 272  }
  0xa2   :  { %1419 = vsyncadd [#allocation26], 4294967024 }
  0xa3   :  { %174 = sfence }
  0xa4   :  { %s1936_s24 = sld [smem:[#allocation43_spill]]  ;;  %vm189_vm0 = vcmask 130048   ;;  %s1937_s3 = sld [smem:[#allocation44_spill]]  ;;  %v183_v21 = vld [vmem:[%s1914_s11] sm:$0xff]  ;;  %v184_v22 = vld [vmem:[%s1914_s11 + $0x8] sm:$0xff]  ;;  %v1451_v23 = vmov 0.0  }
  0xa5   :  { %1030 = vmatprep.subr.bf16.mxu0 %v1451_v23  ;;  %v185_v24 = vpack.c.bf16 %v184_v22, %v183_v21  ;;  %vm1452_vm1 = vmmov 0   ;;  %1036 = vmatprep.subr.bf16.mxu1 %v1451_v23  ;;  %v186_v25 = vld [vmem:[%s1915_s12] sm:$0xff]  ;;  %v187_v26 = vld [vmem:[%s1915_s12 + $0x8] sm:$0xff]  ;;  %vm325_vm2 = vcmask 523264  }
  0xa6   :  { %1032 = vmatprep.mubr.msk.bf16.mxu0 %vm1452_vm1, %v1451_v23  ;;  %1038 = vmatprep.mubr.msk.bf16.mxu1 %vm1452_vm1, %v1451_v23  ;;  %v188_v27 = vpack.c.bf16 %v187_v26, %v186_v25  ;;  %v993_v38 = vld [vmem:[%s1910_s7] ss:$0 sm:$0xff]  ;;  %s1424_s7 = smov 0  }
  0xa7   :  { %1031 = vmatpush3.bf16.msra.mxu0 %v185_v24  ;;  %v994_v40 = vld [vmem:[%s1911_s8] ss:$0 sm:$0xff] }
  0xa8   :  { %1037 = vmatpush3.bf16.msra.mxu1 %v188_v27  ;;  %v996_v43 = vld [vmem:[%s1912_s9] ss:$0 sm:$0xff] }
  0xa9   :  { %v997_v48 = vld [vmem:[%s1913_s10] ss:$0 sm:$0xff] }
  0xaa   :  { %v176_v0 = vld [vmem:[%s1936_s24] sm:$0xff]  ;;  %v178_v1 = vld [vmem:[%s1937_s3 + $0x8] sm:$0xff] }
  0xab   :  { %v177_v2 = vld [vmem:[%s1937_s3] sm:$0xff]  ;;  %v190_v3 = vsel %vm189_vm0, %v176_v0, 0.0  ;;  %v228_v4 = vsel %vm189_vm0, %v178_v1, 0.0 }
  0xac   :  { %191 = vadd.xlane.f32.xlu0 %v190_v3  ;;  %229 = vadd.xlane.f32.xlu1 %v228_v4  ;;  %v225_v5 = vsel %vm189_vm0, %v177_v2, 0.0 }
  0xb0   :  { %226 = vadd.xlane.f32.xlu0 %v225_v5 }
 0x139   :  { %v192_v6 = vpop.xlane.xlu0 %191  ;;  %v230_v7 = vpop.xlane.xlu1 %229 }
 0x13a   :  { %v194_v8 = vmul.f32 0.0625, %v192_v6  ;;  %v232_v9 = vmul.f32 0.0625, %v230_v7 }
 0x13c   :  { %v195_v10 = vsub.f32 %v176_v0, %v194_v8  ;;  %v234_v11 = vsub.f32 %v178_v1, %v232_v9 }
 0x13d   :  { %v227_v12 = vpop.xlane.xlu0 %226 }
 0x13e   :  { %v231_v13 = vmul.f32 0.0625, %v227_v12  ;;  %v196_v14 = vmul.f32 %v195_v10, %v195_v10  ;;  %v236_v15 = vmul.f32 %v234_v11, %v234_v11 }
 0x140   :  { %v233_v16 = vsub.f32 %v177_v2, %v231_v13  ;;  %v197_v17 = vsel %vm189_vm0, %v196_v14, 0.0  ;;  %v240_v18 = vsel %vm189_vm0, %v236_v15, 0.0 }
 0x141   :  { %198 = vadd.xlane.f32.xlu1 %v197_v17 }
 0x142   :  { %v235_v19 = vmul.f32 %v233_v16, %v233_v16 }
 0x144   :  { %v237_v20 = vsel %vm189_vm0, %v235_v19, 0.0 }
 0x145   :  { %241 = vadd.xlane.f32.xlu1 %v240_v18  ;;  %238 = vadd.xlane.f32.xlu0 %v237_v20 }
 0x1ce   :  { %v199_v28 = vpop.xlane.xlu1 %198 }
 0x1cf   :  { %v200_v29 = vmul.f32 0.0625, %v199_v28 }
 0x1d1   :  { %v201_v30 = vadd.f32 1e-05, %v200_v29 }
 0x1d2   :  { %v242_v31 = vpop.xlane.xlu1 %241  ;;  %v239_v32 = vpop.xlane.xlu0 %238 }
 0x1d3   :  { %1106 = vrsqrt.f32 %v201_v30  ;;  %v244_v33 = vmul.f32 0.0625, %v242_v31  ;;  %v243_v34 = vmul.f32 0.0625, %v239_v32 }
 0x1d5   :  { %v246_v35 = vadd.f32 1e-05, %v244_v33  ;;  %v245_v36 = vadd.f32 1e-05, %v243_v34 }
 0x1d7   :  { %1108 = vrsqrt.f32 %v246_v35 }
 0x1d8   :  { %1110 = vrsqrt.f32 %v245_v36 }
 0x1dd   :  { %v1107_v37 = vpop.eup %1106 }
 0x1de   :  { %v203_v39 = vmul.f32 %v1107_v37, %v195_v10 }
 0x1e0   :  { %v210_v41 = vmul.f32 %v993_v38, %v203_v39 }
 0x1e1   :  { %v1109_v42 = vpop.eup %1108 }
 0x1e2   :  { %v1111_v44 = vpop.eup %1110  ;;  %v250_v45 = vmul.f32 %v1109_v42, %v234_v11  ;;  %v217_v46 = vadd.f32 %v994_v40, %v210_v41 }
 0x1e3   :  { %v249_v47 = vmul.f32 %v1111_v44, %v233_v16 }
 0x1e4   :  { %v995_v49 = vmul.f32 -1.442695, %v217_v46  ;;  %v258_v50 = vmul.f32 %v996_v43, %v250_v45 }
 0x1e5   :  { %v257_v51 = vmul.f32 %v996_v43, %v249_v47 }
 0x1e6   :  { %1112 = vpow2.f32 %v995_v49  ;;  %v266_v52 = vadd.f32 %v997_v48, %v258_v50 }
 0x1e7   :  { %v265_v53 = vadd.f32 %v997_v48, %v257_v51 }
 0x1e8   :  { %v999_v54 = vmul.f32 -1.442695, %v266_v52 }
 0x1e9   :  { %v998_v55 = vmul.f32 -1.442695, %v265_v53 }
 0x1ea   :  { %1114 = vpow2.f32 %v999_v54 }
 0x1eb   :  { %1116 = vpow2.f32 %v998_v55 }
 0x1f0   :  { %v1113_v56 = vpop.eup %1112 }
 0x1f1   :  { %v221_v57 = vadd.f32 1.0, %v1113_v56 }
 0x1f3   :  { %1118 = vrcp.f32 %v221_v57 }
 0x1f4   :  { %v1115_v58 = vpop.eup %1114 }
 0x1f5   :  { %v1117_v59 = vpop.eup %1116  ;;  %v274_v60 = vadd.f32 1.0, %v1115_v58 }
 0x1f6   :  { %v273_v61 = vadd.f32 1.0, %v1117_v59 }
 0x1f7   :  { %1120 = vrcp.f32 %v274_v60 }
 0x1f8   :  { %1122 = vrcp.f32 %v273_v61 }
 0x1fd   :  { %v1119_v62 = vpop.eup %1118 }
 0x1fe   :  { %v224_v63 = vmul.f32 %v1119_v62, %v217_v46 }
 0x200   :  { %v281_v0 = vpack.c.bf16 %v224_v63, %v224_v63 }
 0x201   :  { %v1121_v1 = vpop.eup %1120 }
 0x202   :  { %v1123_v2 = vpop.eup %1122  ;;  %1033 = vmatmul.mubr.msk.bf16.vlgmr.msra.gmra.mrb[0].mxu0 %vm189_vm0, %v281_v0  ;;  %v280_v3 = vmul.f32 %v1121_v1, %v266_v52 }
 0x203   :  { %v279_v4 = vmul.f32 %v1123_v2, %v265_v53 }
 0x205   :  { %v327_v5 = vpack.c.bf16 %v280_v3, %v279_v4 }
 0x207   :  { %1039 = vmatmul.mubr.msk.bf16.vlgmr.msra.gmra.mrb[0].mxu1 %vm189_vm0, %v327_v5 }
 0x2d5   :  { %v1692_v6 = vpop.f32.mrb[0].mxu0 }
 0x2d6   :  { %326 = vst.msk [vmem:[#allocation2] sm:$0xff] %vm325_vm2, %v1692_v6  ;;  %v1034_v7 = vpop.f32.mrb[1].mxu0 }
 0x2d7   :  { %v322_v8 = vpop.f32.mrb[2].mxu0 }
 0x2d8   :  { %v1035_v9 = vpop.f32.mrb[3].mxu0 }
 0x2da   :  { %v365_v10 = vpop.f32.mrb[0].mxu1 }
 0x2db   :  { %v1040_v11 = vpop.f32.mrb[1].mxu1 }
 0x2dc   :  { %v368_v12 = vpop.f32.mrb[2].mxu1 }
 0x2dd   :  { %v1041_v13 = vpop.f32.mrb[3].mxu1 }
 0x2de LB: > { %s378_s8 = sld [smem:[#allocation12 + %s1426_s7]]  ;;  %vm383_vm3 = vcmask 516096   ;;  %s382_s18 = scalar_lea.vmem [#allocation3], %s1426_s7  ;;  %s1426_s7 = sphi %s1424_s7, %s377_s7  }
 0x2df   : > { %s379_s9 = sld [smem:[#allocation16 + %s1426_s7]]  ;;  %s387_s2 = scalar_lea.vmem [#allocation4], %s1426_s7 }
 0x2e0   : > { %s377_s7 = sadd.s32 1, %s1426_s7  }
 0x2e1   : > { %p374_p4 = scmp.ge.s32.totalorder %s377_s7, 16  }
 0x2e2   :  { %s1453_s25 = smov (%p374_p4), 96   ;;  %s1454_s26 = smov (%p374_p4), 16   ;;  %vm440_vm4 = vcmask (%p374_p4), 261120   ;;  %vm437_vm5 = vcmask (%p374_p4), 261248  }
 0x2e3   :  { %376 = sbr.rel (!%p374_p4) target bundleno = 734 (0x2de), region = 188  ;;  %441 = vst.msk [vmem:[#allocation6] sm:$0xff] (%p374_p4), %vm440_vm4, %v1451_v23  ;;  %s1455_s27 = smov (%p374_p4), 112  }
 0x2e4   : > { %s380_s10 = scalar_lea.vmem [#allocation2], %s378_s8  ;;  %s1428_s16 = smov (%p374_p4), 0  }
 0x2e5   : > { %v381_v14 = vld [vmem:[%s380_s10] sm:$0x1]  ;;  %s385_s3 = scalar_lea.vmem [#allocation2], %s379_s9 }
 0x2e6   : > { %384 = vst.msk [vmem:[%s382_s18] sm:$0x1] %vm383_vm3, %v381_v14  ;;  %v386_v15 = vld [vmem:[%s385_s3] sm:$0x1] }
 0x2e7   : > { %388 = vst.msk [vmem:[%s387_s2] sm:$0x1] %vm383_vm3, %v386_v15 }
 0x2ed   :  { %v389_v18 = vld [vmem:[#allocation3] sm:$0xff]  ;;  %v390_v21 = vld [vmem:[#allocation3 + $0x8] sm:$0xff] }
 0x2ee   :  { %v391_v16 = vld [vmem:[#allocation4] sm:$0xff]  ;;  %v392_v17 = vld [vmem:[#allocation4 + $0x8] sm:$0xff] }
 0x2ef   :  { %395 = vrot.lane.b32.xlu0 %v391_v16, %s1453_s25 }
 0x2f3   :  { %397 = vrot.lane.b32.xlu0 %v392_v17, %s1453_s25 }
 0x361   :  { %v396_v19 = vpop.permute.xlu0 %395 }
 0x362   :  { %v401_v20 = vadd.f32 %v396_v19, %v389_v18 }
 0x364   :  { %v1700_v22 = vadd.f32 %v401_v20, %v365_v10 }
 0x365   :  { %v398_v24 = vpop.permute.xlu0 %397 }
 0x366   :  { %v1002_v25 = vmul.f32 -1.442695, %v1700_v22  ;;  %v402_v26 = vadd.f32 %v398_v24, %v390_v21 }
 0x368   :  { %1124 = vpow2.f32 %v1002_v25  ;;  %v1703_v27 = vadd.f32 %v402_v26, %v368_v12 }
 0x36a   :  { %v1003_v28 = vmul.f32 -1.442695, %v1703_v27 }
 0x36c   :  { %1126 = vpow2.f32 %v1003_v28 }
 0x372   :  { %v1125_v29 = vpop.eup %1124 }
 0x373   :  { %v411_v30 = vadd.f32 1.0, %v1125_v29 }
 0x375   :  { %1128 = vrcp.f32 %v411_v30 }
 0x376   :  { %v1127_v31 = vpop.eup %1126 }
 0x377   :  { %v412_v32 = vadd.f32 1.0, %v1127_v31 }
 0x379   :  { %1130 = vrcp.f32 %v412_v32 }
 0x37f   :  { %v1129_v33 = vpop.eup %1128 }
 0x380   :  { %419 = vrot.lane.b32.xlu1 %v1129_v33, %s1454_s26 }
 0x383   :  { %v1131_v34 = vpop.eup %1130 }
 0x384   :  { %421 = vrot.lane.b32.xlu1 %v1131_v34, %s1454_s26 }
 0x3f2   :  { %v420_v35 = vpop.permute.xlu1 %419 }
 0x3f3   :  { %v425_v36 = vmul.f32 %v420_v35, %v389_v18 }
 0x3f5   :  { %429 = vrot.lane.b32.xlu0 %v425_v36, %s1455_s27 }
 0x3f6   :  { %v422_v37 = vpop.permute.xlu1 %421 }
 0x3f7   :  { %v426_v38 = vmul.f32 %v422_v37, %v390_v21 }
 0x3f9   :  { %431 = vrot.lane.b32.xlu1 %v426_v38, %s1455_s27 }
 0x467   :  { %v430_v39 = vpop.permute.xlu0 %429 }
 0x468   :  { %435 = vst.msk [vmem:[#allocation5] sm:$0xff] %vm189_vm0, %v430_v39 }
 0x469   :  { %438 = vst.msk [vmem:[#allocation5] sm:$0xff] %vm437_vm5, %v420_v35 }
 0x46b   :  { %v432_v40 = vpop.permute.xlu1 %431 }
 0x46c   :  { %436 = vst.msk [vmem:[#allocation5 + $0x8] sm:$0xff] %vm189_vm0, %v432_v40 }
 0x46d   :  { %439 = vst.msk [vmem:[#allocation5 + $0x8] sm:$0xff] %vm437_vm5, %v422_v37 }
 0x46e LB: > { %s448_s30 = sld [smem:[#allocation16 + %s1430_s16]]  ;;  %s451_s22 = scalar_lea.vmem [#allocation5], %s1430_s16  ;;  %vm454_vm6 = vcmask 253952   ;;  %s1430_s16 = sphi %s1428_s16, %s447_s16  }
 0x46f   : > { %s447_s16 = sadd.s32 1, %s1430_s16  }
 0x470   : > { %p444_p5 = scmp.ge.s32.totalorder %s447_s16, 16  }
 0x471   :  { %v483_v44 = vsel (%p444_p5), %vm189_vm0, %v1700_v22, 0.0  ;;  %v469_v45 = vld [vmem:[%s1909_s6] sm:$0xff] (%p444_p5)  ;;  %v470_v46 = vld [vmem:[%s1909_s6 + $0x8] sm:$0xff] (%p444_p5)  ;;  %1042 = vmatprep.subr.bf16.mxu0 (%p444_p5), %v1451_v23  ;;  %1044 = vmatprep.mubr.msk.bf16.mxu0 (%p444_p5), %vm1452_vm1, %v1451_v23  ;;  %v486_v48 = vsel (%p444_p5), %vm189_vm0, %v1703_v27, 0.0  ;;  %v472_v50 = vld [vmem:[%s1909_s6 + $0x18] sm:$0xff] (%p444_p5)  ;;  %s1432_s8 = smov (%p444_p5), 0  }
 0x472   :  { %446 = sbr.rel (!%p444_p5) target bundleno = 1134 (0x46e), region = 199  ;;  %484 = vadd.xlane.f32.xlu1 (%p444_p5), %v483_v44  ;;  %v539_v47 = vsel (%p444_p5), %vm189_vm0, %v469_v45, 0.0  ;;  %v542_v49 = vsel (%p444_p5), %vm189_vm0, %v470_v46, 0.0  ;;  %v471_v51 = vld [vmem:[%s1909_s6 + $0x10] sm:$0xff] (%p444_p5)  ;;  %v548_v52 = vsel (%p444_p5), %vm189_vm0, %v472_v50, 0.0  ;;  %v478_v24 = vld [vmem:[%s1920_s17 + $0x8] sm:$0xff] (%p444_p5) }
 0x473   :  { %540 = vadd.xlane.f32.xlu0 (%p444_p5), %v539_v47  ;;  %v545_v53 = vsel (%p444_p5), %vm189_vm0, %v471_v51, 0.0  ;;  %v481_v28 = vld [vmem:[#allocation27 + $0x8] sm:$0xff] (%p444_p5) }
 0x474   : > { %v452_v41 = vld [vmem:[%s451_s22] sm:$0x1]  ;;  %s449_s14 = scalar_lea.vmem [#allocation6], %s448_s30 }
 0x475   : > { %v450_v42 = vld [vmem:[%s449_s14] sm:$0x1] }
 0x476   : > { %v453_v43 = vadd.f32 %v452_v41, %v450_v42  ;;  %487 = vadd.xlane.f32.xlu1 (%p444_p5), %v486_v48 }
 0x477   :  { %543 = vadd.xlane.f32.xlu0 (%p444_p5), %v542_v49 }
 0x478   : > { %455 = vst.msk [vmem:[%s449_s14] sm:$0x1] %vm454_vm6, %v453_v43 }
 0x47a   :  { %549 = vadd.xlane.f32.xlu1 %v548_v52  ;;  %v1005_v52 = vld [vmem:[#allocation22] ss:$0 sm:$0xff] }
 0x47b   :  { %546 = vadd.xlane.f32.xlu0 %v545_v53 }
 0x47f   :  { %v1772_v21 = vld [vmem:[#allocation6] sm:$0xff] }
 0x480   :  { %v457_v25 = vadd.f32 1e-06, %v1772_v21 }
 0x4ff   :  { %v485_v54 = vpop.xlane.xlu1 %484 }
 0x500   :  { %v489_v55 = vmul.f32 0.0625, %v485_v54  ;;  %v541_v56 = vpop.xlane.xlu0 %540 }
 0x501   :  { %v551_v57 = vmul.f32 0.0625, %v541_v56 }
 0x502   :  { %v1741_v58 = vsub.f32 %v1700_v22, %v489_v55  ;;  %v477_v22 = vld [vmem:[%s1920_s17] sm:$0xff]  ;;  %s1456_s17 = smov 48  }
 0x503   :  { %v1743_v59 = vsub.f32 %v469_v45, %v551_v57  ;;  %v488_v60 = vpop.xlane.xlu1 %487  ;;  %v479_v26 = vpack.c.bf16 %v478_v24, %v477_v22 }
 0x504   :  { %v490_v61 = vmul.f32 0.0625, %v488_v60  ;;  %v544_v62 = vpop.xlane.xlu0 %543  ;;  %v493_v63 = vmul.f32 %v1741_v58, %v1741_v58  ;;  %v1008_v60 = vld [vmem:[#allocation24] ss:$0 sm:$0xff] }
 0x505   :  { %v552_v0 = vmul.f32 0.0625, %v544_v62  ;;  %v559_v1 = vmul.f32 %v1743_v59, %v1743_v59  ;;  %1043 = vmatpush3.bf16.msra.mxu0 %v479_v26 }
 0x506   :  { %v1750_v2 = vsub.f32 %v1703_v27, %v490_v61  ;;  %v495_v3 = vsel %vm189_vm0, %v493_v63, 0.0  ;;  %v480_v27 = vld [vmem:[#allocation27] sm:$0xff] }
 0x507   :  { %v1753_v4 = vsub.f32 %v470_v46, %v552_v0  ;;  %496 = vadd.xlane.f32.xlu0 %v495_v3  ;;  %v550_v5 = vpop.xlane.xlu1 %549  ;;  %v563_v10 = vsel %vm189_vm0, %v559_v1, 0.0  ;;  %v482_v29 = vpack.c.bf16 %v481_v28, %v480_v27  ;;  %v1009_v0 = vld [vmem:[#allocation25] ss:$0 sm:$0xff] }
 0x508   :  { %v547_v7 = vpop.xlane.xlu0 %546  ;;  %v494_v8 = vmul.f32 %v1750_v2, %v1750_v2  ;;  %v554_v9 = vmul.f32 0.0625, %v550_v5 }
 0x509   :  { %v553_v11 = vmul.f32 0.0625, %v547_v7  ;;  %v560_v12 = vmul.f32 %v1753_v4, %v1753_v4  ;;  %1048 = vmatprep.subr.bf16.mxu1 %v482_v29 }
 0x50a   :  { %v498_v13 = vsel %vm189_vm0, %v494_v8, 0.0  ;;  %v1761_v14 = vsub.f32 %v472_v50, %v554_v9  ;;  %1049 = vmatpush3.bf16.msra.mxu1 %v482_v29  ;;  %v1004_v50 = vld [vmem:[#allocation21] ss:$0 sm:$0xff] }
 0x50b   :  { %v1763_v15 = vsub.f32 %v471_v51, %v553_v11  ;;  %499 = vadd.xlane.f32.xlu1 %v498_v13  ;;  %564 = vadd.xlane.f32.xlu0 %v563_v10  ;;  %v566_v16 = vsel %vm189_vm0, %v560_v12, 0.0 }
 0x50c   :  { %v562_v17 = vmul.f32 %v1761_v14, %v1761_v14 }
 0x50d   :  { %v561_v18 = vmul.f32 %v1763_v15, %v1763_v15 }
 0x50e   :  { %v572_v20 = vsel %vm189_vm0, %v562_v17, 0.0 }
 0x50f   :  { %567 = vadd.xlane.f32.xlu1 %v566_v16  ;;  %v569_v19 = vsel %vm189_vm0, %v561_v18, 0.0 }
 0x510   :  { %570 = vadd.xlane.f32.xlu0 %v569_v19 }
 0x513   :  { %573 = vadd.xlane.f32.xlu1 %v572_v20 }
 0x526   :  { %459 = vrot.lane.b32.xlu0 %v457_v25, %s1455_s27 }
 0x594   :  { %v497_v30 = vpop.xlane.xlu0 %496 }
 0x595   :  { %v501_v31 = vmul.f32 0.0625, %v497_v30 }
 0x597   :  { %v503_v32 = vadd.f32 1e-05, %v501_v31 }
 0x598   :  { %v500_v33 = vpop.xlane.xlu1 %499  ;;  %v565_v34 = vpop.xlane.xlu0 %564 }
 0x599   :  { %1132 = vrsqrt.f32 %v503_v32  ;;  %v502_v35 = vmul.f32 0.0625, %v500_v33  ;;  %v575_v36 = vmul.f32 0.0625, %v565_v34 }
 0x59b   :  { %v504_v37 = vadd.f32 1e-05, %v502_v35  ;;  %v579_v38 = vadd.f32 1e-05, %v575_v36 }
 0x59c   :  { %v568_v39 = vpop.xlane.xlu1 %567 }
 0x59d   :  { %1134 = vrsqrt.f32 %v504_v37  ;;  %v576_v40 = vmul.f32 0.0625, %v568_v39  ;;  %v571_v41 = vpop.xlane.xlu0 %570 }
 0x59e   :  { %1136 = vrsqrt.f32 %v579_v38  ;;  %v577_v42 = vmul.f32 0.0625, %v571_v41 }
 0x59f   :  { %v580_v43 = vadd.f32 1e-05, %v576_v40 }
 0x5a0   :  { %v581_v44 = vadd.f32 1e-05, %v577_v42  ;;  %v574_v45 = vpop.xlane.xlu1 %573 }
 0x5a1   :  { %1138 = vrsqrt.f32 %v580_v43  ;;  %v578_v46 = vmul.f32 0.0625, %v574_v45  ;;  %v460_v47 = vpop.permute.xlu0 %459 }
 0x5a2   :  { %1140 = vrsqrt.f32 %v581_v44 }
 0x5a3   :  { %v1133_v48 = vpop.eup %1132  ;;  %v582_v49 = vadd.f32 1e-05, %v578_v46  ;;  %1142 = vrcp.f32 %v460_v47 }
 0x5a4   :  { %v507_v51 = vmul.f32 %v1133_v48, %v1741_v58 }
 0x5a5   :  { %1144 = vrsqrt.f32 %v582_v49 }
 0x5a6   :  { %v515_v53 = vmul.f32 %v1004_v50, %v507_v51 }
 0x5a7   :  { %v1135_v54 = vpop.eup %1134 }
 0x5a8   :  { %v1137_v55 = vpop.eup %1136  ;;  %v508_v56 = vmul.f32 %v1135_v54, %v1750_v2  ;;  %v523_v57 = vadd.f32 %v1005_v52, %v515_v53 }
 0x5a9   :  { %v587_v61 = vmul.f32 %v1137_v55, %v1743_v59 }
 0x5aa   :  { %v516_v62 = vmul.f32 %v1004_v50, %v508_v56  ;;  %v1006_v63 = vmul.f32 -1.442695, %v523_v57 }
 0x5ab   :  { %v1139_v1 = vpop.eup %1138  ;;  %v597_v3 = vmul.f32 %v1008_v60, %v587_v61 }
 0x5ac   :  { %v1141_v5 = vpop.eup %1140  ;;  %v524_v7 = vadd.f32 %v1005_v52, %v516_v62  ;;  %1146 = vpow2.f32 %v1006_v63  ;;  %v588_v58 = vmul.f32 %v1139_v1, %v1753_v4 }
 0x5ad   :  { %v1143_v8 = vpop.eup %1142  ;;  %v607_v9 = vadd.f32 %v1009_v0, %v597_v3  ;;  %v589_v10 = vmul.f32 %v1141_v5, %v1763_v15 }
 0x5ae   :  { %v1007_v11 = vmul.f32 -1.442695, %v524_v7  ;;  %v598_v2 = vmul.f32 %v1008_v60, %v588_v58  ;;  %v463_v12 = vmul.f32 %v1143_v8, %v1772_v21 }
 0x5af   :  { %v1145_v13 = vpop.eup %1144  ;;  %v1010_v59 = vmul.f32 -1.442695, %v607_v9  ;;  %v599_v16 = vmul.f32 %v1008_v60, %v589_v10 }
 0x5b0   :  { %1148 = vpow2.f32 %v1007_v11  ;;  %v608_v17 = vadd.f32 %v1009_v0, %v598_v2  ;;  %v590_v18 = vmul.f32 %v1145_v13, %v1761_v14  ;;  %465 = vrot.lane.b32.xlu1 %v463_v12, %s1456_s17 }
 0x5b1   :  { %1150 = vpow2.f32 %v1010_v59  ;;  %v609_v4 = vadd.f32 %v1009_v0, %v599_v16 }
 0x5b2   :  { %v1011_v19 = vmul.f32 -1.442695, %v608_v17  ;;  %v600_v20 = vmul.f32 %v1008_v60, %v590_v18 }
 0x5b3   :  { %v1012_v22 = vmul.f32 -1.442695, %v609_v4 }
 0x5b4   :  { %1152 = vpow2.f32 %v1011_v19  ;;  %v610_v15 = vadd.f32 %v1009_v0, %v600_v20 }
 0x5b5   :  { %1154 = vpow2.f32 %v1012_v22 }
 0x5b6   :  { %v1147_v24 = vpop.eup %1146  ;;  %v1013_v21 = vmul.f32 -1.442695, %v610_v15 }
 0x5b7   :  { %v531_v25 = vadd.f32 1.0, %v1147_v24 }
 0x5b8   :  { %1156 = vpow2.f32 %v1013_v21 }
 0x5b9   :  { %1158 = vrcp.f32 %v531_v25 }
 0x5ba   :  { %v1149_v26 = vpop.eup %1148 }
 0x5bb   :  { %v1151_v27 = vpop.eup %1150  ;;  %v532_v28 = vadd.f32 1.0, %v1149_v26 }
 0x5bc   :  { %v623_v14 = vadd.f32 1.0, %v1151_v27 }
 0x5bd   :  { %1160 = vrcp.f32 %v532_v28 }
 0x5be   :  { %v1153_v29 = vpop.eup %1152  ;;  %1162 = vrcp.f32 %v623_v14 }
 0x5bf   :  { %v1155_v30 = vpop.eup %1154  ;;  %v624_v31 = vadd.f32 1.0, %v1153_v29 }
 0x5c0   :  { %v625_v32 = vadd.f32 1.0, %v1155_v30 }
 0x5c1   :  { %1164 = vrcp.f32 %v624_v31 }
 0x5c2   :  { %v1157_v33 = vpop.eup %1156  ;;  %1166 = vrcp.f32 %v625_v32 }
 0x5c3   :  { %v626_v34 = vadd.f32 1.0, %v1157_v33  ;;  %v1159_v35 = vpop.eup %1158 }
 0x5c4   :  { %v537_v37 = vmul.f32 %v1159_v35, %v523_v57 }
 0x5c5   :  { %1168 = vrcp.f32 %v626_v34 }
 0x5c7   :  { %v1161_v36 = vpop.eup %1160 }
 0x5c8   :  { %v538_v38 = vmul.f32 %v1161_v36, %v524_v7  ;;  %v1163_v39 = vpop.eup %1162 }
 0x5c9   :  { %v635_v42 = vmul.f32 %v1163_v39, %v607_v9 }
 0x5ca   :  { %v639_v40 = vpack.c.bf16 %v538_v38, %v537_v37 }
 0x5cb   :  { %v1165_v41 = vpop.eup %1164 }
 0x5cc   :  { %1045 = vmatmul.mubr.msk.bf16.vlgmr.msra.gmra.mrb[4].mxu0 %vm189_vm0, %v639_v40  ;;  %v636_v43 = vmul.f32 %v1165_v41, %v608_v17  ;;  %v1167_v44 = vpop.eup %1166 }
 0x5cd   :  { %v637_v47 = vmul.f32 %v1167_v44, %v609_v4 }
 0x5ce   :  { %v686_v45 = vpack.c.bf16 %v636_v43, %v635_v42 }
 0x5cf   :  { %v1169_v46 = vpop.eup %1168 }
 0x5d0   :  { %1050 = vmatprep.mubr.msk.bf16.mxu1 %vm189_vm0, %v686_v45  ;;  %v638_v48 = vmul.f32 %v1169_v46, %v610_v15 }
 0x5d2   :  { %v687_v49 = vpack.c.bf16 %v638_v48, %v637_v47 }
 0x5d4   :  { %1051 = vmatmul.mubr.msk.bf16.vlgmr.msra.gmra.mrb[4].mxu1 %vm189_vm0, %v687_v49 }
 0x622   :  { %v466_v50 = vpop.permute.xlu1 %465 }
 0x623   :  { %v1794_v51 = vadd.f32 %v466_v50, %v1692_v6 }
 0x69f   :  { %v1796_v52 = vpop.f32.mrb[4].mxu0 }
 0x6a0   :  { %684 = vst.msk [vmem:[#allocation7] sm:$0xff] %vm325_vm2, %v1796_v52  ;;  %v1046_v53 = vpop.f32.mrb[5].mxu0 }
 0x6a1   :  { %v1800_v54 = vpop.f32.mrb[6].mxu0 }
 0x6a2   :  { %685 = vst.msk [vmem:[#allocation7 + $0x8] sm:$0xff] %vm325_vm2, %v1800_v54  ;;  %v1047_v55 = vpop.f32.mrb[7].mxu0 }
 0x6a7   :  { %v1052_v56 = vpop.f32.mrb[4].mxu1 }
 0x6a8   :  { %v728_v57 = vpop.f32.mrb[5].mxu1 }
 0x6a9   :  { %v1053_v60 = vpop.f32.mrb[6].mxu1 }
 0x6aa   :  { %v731_v61 = vpop.f32.mrb[7].mxu1 }
 0x6ab LB: > { %s749_s9 = sld [smem:[#allocation18 + %s1434_s8]]  ;;  %s753_s3 = scalar_lea.vmem [#allocation8], %s1434_s8  ;;  %s1434_s8 = sphi %s1432_s8, %s748_s8  }
 0x6ac   : > { %s750_s10 = sld [smem:[#allocation19 + %s1434_s8]]  ;;  %s758_s16 = scalar_lea.vmem [#allocation9], %s1434_s8 }
 0x6ad   : > { %s748_s8 = sadd.s32 1, %s1434_s8  }
 0x6ae   : > { %p745_p6 = scmp.ge.s32.totalorder %s748_s8, 32  }
 0x6af   :  { %860 = vst.msk [vmem:[#allocation11] sm:$0xff] (%p745_p6), %vm440_vm4, %v1451_v23  ;;  %861 = vst.msk [vmem:[#allocation11 + $0x8] sm:$0xff] (%p745_p6), %vm440_vm4, %v1451_v23 }
 0x6b0   :  { %747 = sbr.rel (!%p745_p6) target bundleno = 1707 (0x6ab), region = 210 }
 0x6b1   : > { %s751_s18 = scalar_lea.vmem [#allocation7], %s749_s9 }
 0x6b2   : > { %v752_v6 = vld [vmem:[%s751_s18] sm:$0x1]  ;;  %s756_s2 = scalar_lea.vmem [#allocation7], %s750_s10 }
 0x6b3   : > { %755 = vst.msk [vmem:[%s753_s3] sm:$0x1] %vm383_vm3, %v752_v6  ;;  %v757_v62 = vld [vmem:[%s756_s2] sm:$0x1] }
 0x6b4   : > { %759 = vst.msk [vmem:[%s758_s16] sm:$0x1] %vm383_vm3, %v757_v62 }
 0x6ba   :  { %v760_v5 = vld [vmem:[#allocation8] sm:$0xff]  ;;  %v762_v7 = vld [vmem:[#allocation8 + $0x10] sm:$0xff]  ;;  %v761_v11 = vld [vmem:[#allocation8 + $0x8] sm:$0xff] }
 0x6bb   :  { %v764_v63 = vld [vmem:[#allocation9] sm:$0xff]  ;;  %v766_v0 = vld [vmem:[#allocation9 + $0x10] sm:$0xff]  ;;  %v765_v1 = vld [vmem:[#allocation9 + $0x8] sm:$0xff] }
 0x6bc   :  { %772 = vrot.lane.b32.xlu0 %v764_v63, %s1453_s25  ;;  %776 = vrot.lane.b32.xlu1 %v766_v0, %s1453_s25  ;;  %v767_v3 = vld [vmem:[#allocation9 + $0x18] sm:$0xff] }
 0x6bd   :  { %v763_v2 = vld [vmem:[#allocation8 + $0x18] sm:$0xff] }
 0x6c0   :  { %774 = vrot.lane.b32.xlu0 %v765_v1, %s1453_s25  ;;  %778 = vrot.lane.b32.xlu1 %v767_v3, %s1453_s25  ;;  %s1436_s25 = smov 0  }
 0x72e   :  { %v773_v58 = vpop.permute.xlu0 %772  ;;  %v777_v8 = vpop.permute.xlu1 %776 }
 0x72f   :  { %v784_v9 = vadd.f32 %v773_v58, %v760_v5  ;;  %v786_v10 = vadd.f32 %v777_v8, %v762_v7 }
 0x731   :  { %v1814_v12 = vadd.f32 %v784_v9, %v728_v57  ;;  %v1816_v23 = vadd.f32 %v1052_v56, %v786_v10 }
 0x732   :  { %v775_v13 = vpop.permute.xlu0 %774  ;;  %v779_v59 = vpop.permute.xlu1 %778 }
 0x733   :  { %v1017_v16 = vmul.f32 -1.442695, %v1814_v12  ;;  %v1019_v17 = vmul.f32 -1.442695, %v1816_v23  ;;  %v785_v18 = vadd.f32 %v775_v13, %v761_v11  ;;  %v787_v4 = vadd.f32 %v779_v59, %v763_v2 }
 0x735   :  { %1170 = vpow2.f32 %v1017_v16  ;;  %v1820_v19 = vadd.f32 %v785_v18, %v731_v61  ;;  %v1822_v20 = vadd.f32 %v1053_v60, %v787_v4 }
 0x736   :  { %1172 = vpow2.f32 %v1019_v17 }
 0x737   :  { %v1018_v22 = vmul.f32 -1.442695, %v1820_v19  ;;  %v1020_v15 = vmul.f32 -1.442695, %v1822_v20 }
 0x739   :  { %1174 = vpow2.f32 %v1018_v22 }
 0x73a   :  { %1176 = vpow2.f32 %v1020_v15 }
 0x73f   :  { %v1171_v24 = vpop.eup %1170 }
 0x740   :  { %v1173_v21 = vpop.eup %1172  ;;  %v804_v25 = vadd.f32 1.0, %v1171_v24 }
 0x741   :  { %v806_v26 = vadd.f32 1.0, %v1173_v21 }
 0x742   :  { %1178 = vrcp.f32 %v804_v25 }
 0x743   :  { %v1175_v27 = vpop.eup %1174  ;;  %1180 = vrcp.f32 %v806_v26 }
 0x744   :  { %v1177_v28 = vpop.eup %1176  ;;  %v805_v14 = vadd.f32 1.0, %v1175_v27 }
 0x745   :  { %v807_v29 = vadd.f32 1.0, %v1177_v28 }
 0x746   :  { %1182 = vrcp.f32 %v805_v14 }
 0x747   :  { %1184 = vrcp.f32 %v807_v29 }
 0x74c   :  { %v1179_v30 = vpop.eup %1178 }
 0x74d   :  { %820 = vrot.lane.b32.xlu0 %v1179_v30, %s1454_s26  ;;  %v1181_v31 = vpop.eup %1180 }
 0x750   :  { %v1183_v32 = vpop.eup %1182 }
 0x751   :  { %822 = vrot.lane.b32.xlu1 %v1183_v32, %s1454_s26  ;;  %824 = vrot.lane.b32.xlu0 %v1181_v31, %s1454_s26  ;;  %v1185_v33 = vpop.eup %1184 }
 0x755   :  { %826 = vrot.lane.b32.xlu1 %v1185_v33, %s1454_s26 }
 0x7bf   :  { %v821_v34 = vpop.permute.xlu0 %820 }
 0x7c0   :  { %v832_v35 = vmul.f32 %v821_v34, %v760_v5 }
 0x7c2   :  { %840 = vrot.lane.b32.xlu0 %v832_v35, %s1455_s27 }
 0x7c3   :  { %v823_v36 = vpop.permute.xlu1 %822  ;;  %v825_v37 = vpop.permute.xlu0 %824 }
 0x7c4   :  { %v833_v38 = vmul.f32 %v823_v36, %v761_v11  ;;  %v834_v39 = vmul.f32 %v825_v37, %v762_v7 }
 0x7c6   :  { %842 = vrot.lane.b32.xlu1 %v833_v38, %s1455_s27  ;;  %844 = vrot.lane.b32.xlu0 %v834_v39, %s1455_s27 }
 0x7c7   :  { %v827_v40 = vpop.permute.xlu1 %826 }
 0x7c8   :  { %v835_v41 = vmul.f32 %v827_v40, %v763_v2 }
 0x7ca   :  { %846 = vrot.lane.b32.xlu1 %v835_v41, %s1455_s27 }
 0x834   :  { %v841_v42 = vpop.permute.xlu0 %840 }
 0x835   :  { %852 = vst.msk [vmem:[#allocation10] sm:$0xff] %vm189_vm0, %v841_v42 }
 0x836   :  { %856 = vst.msk [vmem:[#allocation10] sm:$0xff] %vm437_vm5, %v821_v34 }
 0x838   :  { %v843_v43 = vpop.permute.xlu1 %842  ;;  %v845_v44 = vpop.permute.xlu0 %844 }
 0x839   :  { %853 = vst.msk [vmem:[#allocation10 + $0x8] sm:$0xff] %vm189_vm0, %v843_v43  ;;  %854 = vst.msk [vmem:[#allocation10 + $0x10] sm:$0xff] %vm189_vm0, %v845_v44 }
 0x83a   :  { %857 = vst.msk [vmem:[#allocation10 + $0x8] sm:$0xff] %vm437_vm5, %v823_v36  ;;  %858 = vst.msk [vmem:[#allocation10 + $0x10] sm:$0xff] %vm437_vm5, %v825_v37 }
 0x83c   :  { %v847_v45 = vpop.permute.xlu1 %846 }
 0x83d   :  { %855 = vst.msk [vmem:[#allocation10 + $0x18] sm:$0xff] %vm189_vm0, %v847_v45 }
 0x83e   :  { %859 = vst.msk [vmem:[#allocation10 + $0x18] sm:$0xff] %vm437_vm5, %v827_v40 }
 0x83f LB: > { %s868_s26 = sld [smem:[#allocation19 + %s1438_s25]]  ;;  %s871_s30 = scalar_lea.vmem [#allocation10], %s1438_s25  ;;  %s1438_s25 = sphi %s1436_s25, %s867_s25  }
 0x840   : > { %s867_s25 = sadd.s32 1, %s1438_s25  }
 0x841   : > { %p864_p7 = scmp.ge.s32.totalorder %s867_s25, 32  }
 0x842   :  { %917 = vst.msk [vmem:[%s1924_s21] sm:$0xff] (%p864_p7), %vm189_vm0, %v1814_v12  ;;  %918 = vst.msk [vmem:[%s1924_s21 + $0x8] sm:$0xff] (%p864_p7), %vm189_vm0, %v1820_v19  ;;  %s1457_s1 = smov (%p864_p7), 80  }
 0x843   :  { %866 = sbr.rel (!%p864_p7) target bundleno = 2111 (0x83f), region = 221  ;;  %919 = vst.msk [vmem:[%s1924_s21 + $0x10] sm:$0xff] (%p864_p7), %vm189_vm0, %v1816_v23  ;;  %920 = vst.msk [vmem:[%s1924_s21 + $0x18] sm:$0xff] (%p864_p7), %vm189_vm0, %v1822_v20  ;;  %s1458_s21 = smov (%p864_p7), [#allocation28]  }
 0x845   : > { %v872_v46 = vld [vmem:[%s871_s30] sm:$0x1]  ;;  %s869_s22 = scalar_lea.vmem [#allocation11], %s868_s26 }
 0x846   : > { %v870_v47 = vld [vmem:[%s869_s22] sm:$0x1] }
 0x847   : > { %v873_v48 = vadd.f32 %v872_v46, %v870_v47 }
 0x849   : > { %875 = vst.msk [vmem:[%s869_s22] sm:$0x1] %vm454_vm6, %v873_v48 }
 0x850   :  { %v876_v49 = vld [vmem:[#allocation11] sm:$0xff]  ;;  %v877_v50 = vld [vmem:[#allocation11 + $0x8] sm:$0xff] }
 0x851   :  { %v878_v53 = vadd.f32 1e-06, %v876_v49  ;;  %v879_v55 = vadd.f32 1e-06, %v877_v50 }
 0x853   :  { %882 = vrot.lane.b32.xlu0 %v878_v53, %s1455_s27 }
 0x857   :  { %884 = vrot.lane.b32.xlu0 %v879_v55, %s1455_s27  ;;  %s927_s27 = sshll.u32 %s1458_s21, 4  ;;  %s928_s27 = int_to_ptr.vmem [resolvable:$true] %s927_s27 }
 0x858   :  { %s1348_s6 = scalar_lea.vmem %s928_s27, 128  ;;  %p1353_p9 = scmp.lt.s32.totalorder %s928_s27, %s928_s27 }
 0x859   :  { %p1349_p8 = scmp.ne.s32.totalorder %s928_s27, %s1348_s6  ;;  %p1354_p10 = scmp.lt.s32.totalorder %s1348_s6, %s1348_s6 }
 0x85b   :  { %903 = vrot.lane.b32.xlu0 %v1794_v51, %s1457_s1  ;;  %p1355_p11 = por %p1354_p10, %p1353_p9 }
 0x85d   :  { %p1356_p12 = pnand %p1355_p11, %p1349_p8 }
 0x8c5   :  { %v883_v56 = vpop.permute.xlu0 %882 }
 0x8c6   :  { %1186 = vrcp.f32 %v883_v56 }
 0x8c9   :  { %v885_v57 = vpop.permute.xlu0 %884 }
 0x8ca   :  { %1188 = vrcp.f32 %v885_v57 }
 0x8cd   :  { %v904_v63 = vpop.permute.xlu0 %903 }
 0x8ce   :  { %906 = vst.msk [vmem:[#allocation28] sm:$0xff] %vm189_vm0, %v904_v63 }
 0x8d0   :  { %v1187_v60 = vpop.eup %1186 }
 0x8d1   :  { %v889_v61 = vmul.f32 %v1187_v60, %v876_v49 }
 0x8d3   :  { %894 = vrot.lane.b32.xlu1 %v889_v61, %s1456_s17 }
 0x8d4   :  { %v1189_v6 = vpop.eup %1188 }
 0x8d5   :  { %v891_v62 = vmul.f32 %v1189_v6, %v877_v50 }
 0x8d7   :  { %896 = vrot.lane.b32.xlu1 %v891_v62, %s1456_s17 }
 0x8d8   :  { %1359 = shalt.err (!%p1356_p12)
}
 0x8d9   :  { %s1360_s7 = scalar_lea.hbm %s1922_s19, 128 }
 0x8da   :  { %p1361_p13 = scmp.ne.s32.totalorder %s1922_s19, %s1360_s7  ;;  %p1364_p0 = scmp.lt.u32.totalorder %s1360_s7, %s1922_s19 }
 0x8dc   :  { %p1366_p1 = pnand %p1364_p0, %p1361_p13 }
 0x8de   :  { %1369 = shalt.err (!%p1366_p1)
}
 0x8df   :  { %930 = dma.vmem_to_hbm [thread:$0]  %s928_s27, 128, %s1922_s19, [#allocation14]  }
 0x8e0   :  { %s1459_s2 = smov [#allocation29]  }
 0x8e1   :  { %s936_s16 = sshll.u32 %s1459_s2, 4  ;;  %s937_s16 = int_to_ptr.vmem [resolvable:$true] %s936_s16 }
 0x8e2   :  { %s1370_s19 = scalar_lea.vmem %s937_s16, 256  ;;  %p1375_p3 = scmp.lt.s32.totalorder %s937_s16, %s937_s16 }
 0x8e3   :  { %p1371_p2 = scmp.ne.s32.totalorder %s937_s16, %s1370_s19  ;;  %p1376_p4 = scmp.lt.s32.totalorder %s1370_s19, %s1370_s19 }
 0x8e5   :  { %p1377_p5 = por %p1376_p4, %p1375_p3 }
 0x8e7   :  { %p1378_p6 = pnand %p1377_p5, %p1371_p2 }
 0x945   :  { %v895_v51 = vpop.permute.xlu1 %894 }
 0x946   :  { %v900_v0 = vadd.f32 %v895_v51, %v1796_v52 }
 0x948   :  { %909 = vrot.lane.b32.xlu1 %v900_v0, %s1457_s1 }
 0x949   :  { %v897_v1 = vpop.permute.xlu1 %896 }
 0x94a   :  { %v901_v3 = vadd.f32 %v897_v1, %v1800_v54 }
 0x94c   :  { %911 = vrot.lane.b32.xlu0 %v901_v3, %s1457_s1 }
 0x9ba   :  { %v910_v5 = vpop.permute.xlu1 %909 }
 0x9bb   :  { %915 = vst.msk [vmem:[#allocation29] sm:$0xff] %vm189_vm0, %v910_v5 }
 0x9be   :  { %v912_v7 = vpop.permute.xlu0 %911 }
 0x9bf   :  { %916 = vst.msk [vmem:[#allocation29 + $0x8] sm:$0xff] %vm189_vm0, %v912_v7 }
 0x9c0   :  { %1381 = shalt.err (!%p1378_p6)
}
 0x9c1   :  { %s1382_s30 = scalar_lea.hbm %s1923_s20, 256 }
 0x9c2   :  { %p1383_p7 = scmp.ne.s32.totalorder %s1923_s20, %s1382_s30  ;;  %p1386_p8 = scmp.lt.u32.totalorder %s1382_s30, %s1923_s20 }
 0x9c4   :  { %p1388_p9 = pnand %p1386_p8, %p1383_p7 }
 0x9c6   :  { %1391 = shalt.err (!%p1388_p9)
}
 0x9c7   :  { %942 = dma.vmem_to_hbm [thread:$0]  %s937_s16, 256, %s1923_s20, [#allocation30], %s1449_s15, %s1449_s15, %s1450_s29  }
 0x9c8   :  { %1420 = dma.done.wait [#allocation14], 128  }
 0x9c9   :  { %1421 = vsyncadd [#allocation14], 4294967168 }
 0x9ca   :  { %1422 = dma.done.wait [#allocation30], 256  }
 0x9cb   :  { %1423 = vsyncadd [#allocation30], 4294967040 }
 0x9cc   :  { %953 = vsyncpa [#allocation13], 1 }
 0x9cd   :  { %954 = vsyncpa [#allocation23], 1 }
 0x9ce   :  { %955 = vsyncpa [#allocation26], 1 }
 0x9cf   :  { %956 = vsyncpa [#allocation14], 1 }
 0x9d0   :  { %957 = vsyncpa [#allocation30], 1 }
 0x9d1   :  { %958 = vsyncpa [#allocation15], 1 }
 0x9d2   :  { %959 = vsyncpa [#allocation17], 1 }
 0x9d3   :  { %960 = vsyncpa [#allocation20], 1 }

</bundles_post_ra>
